<compile_context>
chip_gen: v7x
topology: tpu7x:2x2x1
jax: 0.10.0
libtpu: 0.0.40
codegen_flags: <defaults>
</compile_context>

<pallas_src>
import functools
import math

import jax
import jax.numpy as jnp
from jax import lax
from jax.experimental import pallas as pl
from jax.experimental.pallas import tpu as pltpu


MATMUL_DTYPE = jnp.bfloat16   # MXU operand dtype (accumulation is always f32)


# ---------------------------------------------------------------------------
# in-kernel helpers (traced inside the Pallas kernel; f32)
# ---------------------------------------------------------------------------
def _layer_norm(x, gamma, beta, eps):
    mean = jnp.mean(x, axis=-1, keepdims=True)
    var = jnp.mean(jnp.square(x - mean), axis=-1, keepdims=True)
    return (x - mean) * lax.rsqrt(var + eps) * gamma + beta


def _erf(x):
    # Abramowitz & Stegun 7.1.26 (|err| < 1.5e-7, i.e. float32-accurate).
    p = 0.3275911
    a1, a2, a3, a4, a5 = 0.254829592, -0.284496736, 1.421413741, -1.453152027, 1.061405429
    ax = jnp.abs(x)
    t = 1.0 / (1.0 + p * ax)
    poly = ((((a5 * t + a4) * t + a3) * t + a2) * t + a1) * t
    y = 1.0 - poly * jnp.exp(-ax * ax)
    return jnp.where(x >= 0, y, -y)


def _gelu_exact(x):
    # matches torch.nn.GELU() (exact, erf-based)
    return 0.5 * x * (1.0 + _erf(x * 0.7071067811865476))


# ---------------------------------------------------------------------------
# the fused encoder kernel: grid = (num_layers,)
#   - out_ref   : (B, S, H) residual stream, resident across the layer axis
#   - logits_ref: (B, num_labels), written at the last layer (classifier fused)
#   - per-layer weights (leading L axis) stream through double-buffered VMEM
# ---------------------------------------------------------------------------
def encoder_kernel(x_ref, emb_g_ref, emb_b_ref,
                   ln1_g_ref, ln1_b_ref, wqkv_ref, bqkv_ref, wo_ref, bo_ref,
                   ln2_g_ref, ln2_b_ref, w1_ref, b1_ref, w2_ref, b2_ref,
                   wc_ref, bc_ref,
                   out_ref, logits_ref, *, num_heads):
    layer = pl.program_id(0)
    B, S, H = out_ref.shape
    NH = num_heads
    HD = H // NH
    scale = 1.0 / math.sqrt(HD)
    cdt = MATMUL_DTYPE

    # ---- layer 0: embedding LayerNorm (eps=1e-12) on the raw tok+pos sum ----
    @pl.when(layer == 0)
    def _():
        emb = x_ref[...].reshape(B * S, H)
        out_ref[...] = _layer_norm(
            emb, emb_g_ref[...], emb_b_ref[...], 1e-12).reshape(B, S, H)
        logits_ref[...] = jnp.zeros_like(logits_ref)

    x2 = out_ref[...].reshape(B * S, H)                  # f32 residual stream

    # ---- multi-head self-attention on the pre-LN hidden state ---------------
    h = _layer_norm(x2, ln1_g_ref[0], ln1_b_ref[0], 1e-5)
    hc = h.astype(cdt)
    qkv = jnp.dot(hc, wqkv_ref[0],
                  preferred_element_type=jnp.float32) + bqkv_ref[0]   # (B*S, 3H)
    q = qkv[:, :H] * scale          # fold 1/sqrt(HD) into q (not into scores)
    k = qkv[:, H:2 * H]
    v = qkv[:, 2 * H:]

    def split_heads(t):             # (B*S, H) f32 -> (B*NH, S, HD) bf16
        return t.reshape(B, S, NH, HD).transpose(0, 2, 1, 3) \
                .reshape(B * NH, S, HD).astype(cdt)

    qh, kh, vh = split_heads(q), split_heads(k), split_heads(v)
    scores = jnp.einsum('xqd,xkd->xqk', qh, kh,
                        preferred_element_type=jnp.float32)      # (B*NH, S, S)
    m = jnp.max(scores, axis=-1, keepdims=True)
    e = jnp.exp(scores - m)
    denom = jnp.sum(e, axis=-1, keepdims=True)
    p = e * pl.reciprocal(denom, approx=True)                    # softmax (EUP)
    ctx = jnp.einsum('xqk,xkd->xqd', p.astype(cdt), vh,
                     preferred_element_type=jnp.float32)         # (B*NH, S, HD)
    ctx_cat = ctx.reshape(B, NH, S, HD).transpose(0, 2, 1, 3).reshape(B * S, H)
    attn = jnp.dot(ctx_cat.astype(cdt), wo_ref[0],
                   preferred_element_type=jnp.float32) + bo_ref[0]
    x2 = x2 + attn                                               # residual 1

    # ---- position-wise feed-forward on the pre-LN hidden state --------------
    g2 = _layer_norm(x2, ln2_g_ref[0], ln2_b_ref[0], 1e-5)
    f = jnp.dot(g2.astype(cdt), w1_ref[0],
                preferred_element_type=jnp.float32) + b1_ref[0]
    f = _gelu_exact(f)                                           # exact GELU
    f = jnp.dot(f.astype(cdt), w2_ref[0],
                preferred_element_type=jnp.float32) + b2_ref[0]
    x2 = x2 + f                                                  # residual 2

    out_ref[...] = x2.reshape(B, S, H)

    # ---- last layer: fused classification head on the [CLS] rows ------------
    @pl.when(layer == pl.num_programs(0) - 1)
    def _():
        cls = x2.reshape(B, S, H)[:, 0, :]                       # (B, H) f32
        logits_ref[...] = jnp.dot(cls, wc_ref[...],
                                  preferred_element_type=jnp.float32) + bc_ref[...]


# ---------------------------------------------------------------------------
# wrapper
# ---------------------------------------------------------------------------
def _encoder_forward(x_emb_raw, emb_g, emb_b, lw, wc, bc, num_heads):
    B, S, H = x_emb_raw.shape
    L = lw['wqkv'].shape[0]
    I = lw['w1'].shape[2]
    NL = wc.shape[1]
    NH = num_heads

    wmap = lambda l: (l, 0, 0)
    cmap2 = lambda l: (0, 0)
    cmap3 = lambda l: (0, 0, 0)

    def wspec(d1, d2):
        return pl.BlockSpec((1, d1, d2), wmap)

    in_specs = [
        pl.BlockSpec((B, S, H), cmap3),        # raw tok+pos embedding sum
        pl.BlockSpec((1, H), cmap2),           # emb LN gamma
        pl.BlockSpec((1, H), cmap2),           # emb LN beta
        wspec(1, H), wspec(1, H),              # ln1 gamma, beta
        wspec(H, 3 * H), wspec(1, 3 * H),      # fused wqkv, bqkv
        wspec(H, H), wspec(1, H),              # wo, bo
        wspec(1, H), wspec(1, H),              # ln2 gamma, beta
        wspec(H, I), wspec(1, I),              # w1, b1
        wspec(I, H), wspec(1, H),              # w2, b2
        pl.BlockSpec((H, NL), cmap2),          # classifier weight
        pl.BlockSpec((1, NL), cmap2),          # classifier bias
    ]
    out_specs = (pl.BlockSpec((B, S, H), cmap3),   # residual stream (resident)
                 pl.BlockSpec((B, NL), cmap2))     # logits (resident)
    out_shape = (jax.ShapeDtypeStruct((B, S, H), jnp.float32),
                 jax.ShapeDtypeStruct((B, NL), jnp.float32))

    args = (x_emb_raw, emb_g, emb_b,
            lw['ln1_g'], lw['ln1_b'], lw['wqkv'], lw['bqkv'], lw['wo'], lw['bo'],
            lw['ln2_g'], lw['ln2_b'], lw['w1'], lw['b1'], lw['w2'], lw['b2'],
            wc, bc)

    # VMEM budget: double-buffered per-layer weight stream + resident
    # activation/logit blocks + constant blocks + in-kernel temporaries
    # (QKV, score tensors, FF activation, bf16 casts).  Capped at 64 MiB so it
    # is valid on v7x (64 MiB physical) as well as v5e/v6e (128 MiB).
    layer_args = args[3:15]
    per_layer_bytes = sum(math.prod(a.shape[1:]) * a.dtype.itemsize
                          for a in layer_args)
    const_bytes = sum(a.size * a.dtype.itemsize
                      for a in (x_emb_raw, emb_g, emb_b, wc, bc))
    resident_bytes = 4 * (B * S * H + B * NL)
    temp_bytes = 4 * (B * S * 3 * H          # qkv f32
                      + 3 * B * NH * S * S   # scores / e / p f32
                      + 2 * B * S * I        # FF activation f32 (+ bf16 cast)
                      + 6 * B * S * H)       # q/k/v/ctx/residual temporaries
    vmem_limit = int(min(64 * 1024 * 1024,
                         max(16 * 1024 * 1024,
                             2 * per_layer_bytes + const_bytes
                             + resident_bytes + temp_bytes + (4 << 20))))

    grid_spec = pltpu.PrefetchScalarGridSpec(
        num_scalar_prefetch=0,
        grid=(L,),
        in_specs=in_specs,
        out_specs=out_specs,
    )
    hidden, logits = pl.pallas_call(
        functools.partial(encoder_kernel, num_heads=num_heads),
        out_shape=out_shape,
        grid_spec=grid_spec,
        compiler_params=pltpu.CompilerParams(
            dimension_semantics=("arbitrary",),
            vmem_limit_bytes=vmem_limit),
    )(*args)
    return hidden, logits


@functools.partial(jax.jit, static_argnames=("num_heads",))
def transformer_forward(ids, params, *, num_heads):
    B, S = ids.shape
    assert S <= params['pos_emb'].shape[0], "sequence longer than max_position_embeddings"
    # Embedding row gather is pure data movement -> plain XLA gather; the
    # embedding LayerNorm is fused into the encoder kernel (layer==0 branch).
    tok = jnp.take(params['tok_emb'], ids, axis=0)            # (B, S, H)
    pos = params['pos_emb'][:S][None]                         # (1, S, H)
    x_raw = tok + pos
    _, logits = _encoder_forward(x_raw, params['emb_ln_g'], params['emb_ln_b'],
                                 params['layers'], params['wc'], params['bc'],
                                 num_heads)
    return logits


# ---------------------------------------------------------------------------
# deterministic parameter init (synthetic; fused / layer-stacked layout)
#   wqkv: (L, H, 3H) = per-head q/k/v Linear weights concatenated on the
#   output axis (all q heads, then all k heads, then all v heads);
#   wo: (L, H, H) = output_linear.weight.T.  Dropout = eval mode.
# ---------------------------------------------------------------------------
def init_params(key, cfg):
    H, I = cfg['hidden_size'], cfg['intermediate_size']
    L = cfg['num_hidden_layers']
    V, P = cfg['vocab_size'], cfg['max_position_embeddings']
    NL = cfg['num_labels']
    wdt = MATMUL_DTYPE

    def nrm(k, shape, scale=0.02, dtype=jnp.float32):
        return (scale * jax.random.normal(k, shape, jnp.float32)).astype(dtype)

    ks = jax.random.split(key, 12)
    return {
        'tok_emb': nrm(ks[0], (V, H)),
        'pos_emb': nrm(ks[1], (P, H)),
        'emb_ln_g': jnp.ones((1, H), jnp.float32),
        'emb_ln_b': jnp.zeros((1, H), jnp.float32),
        'wc': nrm(ks[2], (H, NL)),
        'bc': nrm(ks[3], (1, NL), 0.01),
        'layers': {
            'ln1_g': jnp.ones((L, 1, H), jnp.float32),
            'ln1_b': jnp.zeros((L, 1, H), jnp.float32),
            'ln2_g': jnp.ones((L, 1, H), jnp.float32),
            'ln2_b': jnp.zeros((L, 1, H), jnp.float32),
            'wqkv': nrm(ks[4], (L, H, 3 * H), dtype=wdt),
            'bqkv': nrm(ks[5], (L, 1, 3 * H), 0.01),
            'wo': nrm(ks[6], (L, H, H), dtype=wdt),
            'bo': nrm(ks[7], (L, 1, H), 0.01),
            'w1': nrm(ks[8], (L, H, I), dtype=wdt),
            'b1': nrm(ks[9], (L, 1, I), 0.01),
            'w2': nrm(ks[10], (L, I, H), dtype=wdt),
            'b2': nrm(ks[11], (L, 1, H), 0.01),
        },
    }


# ---------------------------------------------------------------------------
# pure-JAX reference (same math as the torch module in eval mode, f32)
# ---------------------------------------------------------------------------
def reference_forward(ids, params, num_heads):
    B, S = ids.shape

    def ln(x, g, b, eps):
        m = jnp.mean(x, -1, keepdims=True)
        v = jnp.mean((x - m) ** 2, -1, keepdims=True)
        return (x - m) / jnp.sqrt(v + eps) * g + b

    x = ln(params['tok_emb'][ids] + params['pos_emb'][:S][None],
           params['emb_ln_g'], params['emb_ln_b'], 1e-12)

    lw = jax.tree_util.tree_map(lambda a: a.astype(jnp.float32), params['layers'])
    L, H, _ = lw['wqkv'].shape
    HD = H // num_heads
    for li in range(L):
        h = ln(x, lw['ln1_g'][li], lw['ln1_b'][li], 1e-5)
        qkv = h @ lw['wqkv'][li] + lw['bqkv'][li]
        q, k, v = qkv[..., :H], qkv[..., H:2 * H], qkv[..., 2 * H:]
        q = q.reshape(B, S, num_heads, HD).transpose(0, 2, 1, 3)
        k = k.reshape(B, S, num_heads, HD).transpose(0, 2, 1, 3)
        v = v.reshape(B, S, num_heads, HD).transpose(0, 2, 1, 3)
        s = jnp.einsum('bhqd,bhkd->bhqk', q, k) / math.sqrt(HD)
        w = jax.nn.softmax(s, axis=-1)
        ctx = jnp.einsum('bhqk,bhkd->bhqd', w, v)
        ctx = ctx.transpose(0, 2, 1, 3).reshape(B, S, H)
        x = x + (ctx @ lw['wo'][li] + lw['bo'][li])
        g2 = ln(x, lw['ln2_g'][li], lw['ln2_b'][li], 1e-5)
        f = jax.nn.gelu(g2 @ lw['w1'][li] + lw['b1'][li], approximate=False)
        x = x + (f @ lw['w2'][li] + lw['b2'][li])
    return x[:, 0, :] @ params['wc'] + params['bc']


if __name__ == "__main__":
    cfg = dict(vocab_size=100, max_position_embeddings=16, hidden_size=32,
               num_attention_heads=4, intermediate_size=64,
               num_hidden_layers=2, num_labels=3, hidden_dropout_prob=0.1)
    key = jax.random.PRNGKey(0)
    pkey, dkey = jax.random.split(key)
    params = init_params(pkey, cfg)

    B, S = 2, 8
    input_ids = jax.random.randint(dkey, (B, S), 0, cfg['vocab_size'],
                                   dtype=jnp.int32)

    logits = transformer_forward(input_ids, params,
                                 num_heads=cfg['num_attention_heads'])
    logits = jax.block_until_ready(logits)

    ref = reference_forward(input_ids, params, cfg['num_attention_heads'])
    assert logits.shape == (B, cfg['num_labels'])
    assert jnp.allclose(logits, ref, atol=2e-3, rtol=2e-3), (logits, ref)
    print("KERNEL_OK")
</pallas_src>

<mosaic_0001>
module attributes {stable_mosaic.version = 11 : i64} {
  func.func @encoder_kernel(%arg0: i32, %arg1: memref<2x8x32xf32, #tpu.memory_space<vmem>>, %arg2: memref<1x32xf32, #tpu.memory_space<vmem>>, %arg3: memref<1x32xf32, #tpu.memory_space<vmem>>, %arg4: memref<1x1x32xf32, #tpu.memory_space<vmem>>, %arg5: memref<1x1x32xf32, #tpu.memory_space<vmem>>, %arg6: memref<1x32x96xbf16, #tpu.memory_space<vmem>>, %arg7: memref<1x1x96xf32, #tpu.memory_space<vmem>>, %arg8: memref<1x32x32xbf16, #tpu.memory_space<vmem>>, %arg9: memref<1x1x32xf32, #tpu.memory_space<vmem>>, %arg10: memref<1x1x32xf32, #tpu.memory_space<vmem>>, %arg11: memref<1x1x32xf32, #tpu.memory_space<vmem>>, %arg12: memref<1x32x64xbf16, #tpu.memory_space<vmem>>, %arg13: memref<1x1x64xf32, #tpu.memory_space<vmem>>, %arg14: memref<1x64x32xbf16, #tpu.memory_space<vmem>>, %arg15: memref<1x1x32xf32, #tpu.memory_space<vmem>>, %arg16: memref<32x3xf32, #tpu.memory_space<vmem>>, %arg17: memref<1x3xf32, #tpu.memory_space<vmem>>, %arg18: memref<2x8x32xf32, #tpu.memory_space<vmem>>, %arg19: memref<2x3xf32, #tpu.memory_space<vmem>>) attributes {dimension_semantics = [#tpu.dimension_semantics<arbitrary>], iteration_bounds = array<i64: 2>, scalar_prefetch = 0 : i64, scratch_operands = 0 : i64, tpu.core_type = #tpu.core_type<tc>, window_params = [{pipeline_mode = #tpu.pipeline_mode<synchronous>, transform_indices = @transform_0, window_bounds = array<i64: 2, 8, 32>}, {pipeline_mode = #tpu.pipeline_mode<synchronous>, transform_indices = @transform_1, window_bounds = array<i64: 1, 32>}, {pipeline_mode = #tpu.pipeline_mode<synchronous>, transform_indices = @transform_2, window_bounds = array<i64: 1, 32>}, {transform_indices = @transform_3, window_bounds = array<i64: 1, 1, 32>}, {transform_indices = @transform_4, window_bounds = array<i64: 1, 1, 32>}, {transform_indices = @transform_5, window_bounds = array<i64: 1, 32, 96>}, {transform_indices = @transform_6, window_bounds = array<i64: 1, 1, 96>}, {transform_indices = @transform_7, window_bounds = array<i64: 1, 32, 32>}, {transform_indices = @transform_8, window_bounds = array<i64: 1, 1, 32>}, {transform_indices = @transform_9, window_bounds = array<i64: 1, 1, 32>}, {transform_indices = @transform_10, window_bounds = array<i64: 1, 1, 32>}, {transform_indices = @transform_11, window_bounds = array<i64: 1, 32, 64>}, {transform_indices = @transform_12, window_bounds = array<i64: 1, 1, 64>}, {transform_indices = @transform_13, window_bounds = array<i64: 1, 64, 32>}, {transform_indices = @transform_14, window_bounds = array<i64: 1, 1, 32>}, {pipeline_mode = #tpu.pipeline_mode<synchronous>, transform_indices = @transform_15, window_bounds = array<i64: 32, 3>}, {pipeline_mode = #tpu.pipeline_mode<synchronous>, transform_indices = @transform_16, window_bounds = array<i64: 1, 3>}, {pipeline_mode = #tpu.pipeline_mode<synchronous>, transform_indices = @transform_17, window_bounds = array<i64: 2, 8, 32>}, {pipeline_mode = #tpu.pipeline_mode<synchronous>, transform_indices = @transform_18, window_bounds = array<i64: 2, 3>}]} {
    %c0_i32 = arith.constant 0 : i32
    %0 = arith.cmpi eq, %arg0, %c0_i32 : i32
    %1 = arith.extui %0 : i1 to i32
    %c0_i32_0 = arith.constant 0 : i32
    %2 = arith.cmpi ne, %1, %c0_i32_0 : i32
    scf.if %2 {
      %c0_76 = arith.constant 0 : index
      %c0_77 = arith.constant 0 : index
      %c0_78 = arith.constant 0 : index
      %169 = vector.load %arg1[%c0_76, %c0_77, %c0_78] : memref<2x8x32xf32, #tpu.memory_space<vmem>>, vector<2x8x32xf32>
      %170 = vector.shape_cast %169 : vector<2x8x32xf32> to vector<16x32xf32>
      %c0_79 = arith.constant 0 : index
      %c0_80 = arith.constant 0 : index
      %171 = vector.load %arg2[%c0_79, %c0_80] : memref<1x32xf32, #tpu.memory_space<vmem>>, vector<1x32xf32>
      %c0_81 = arith.constant 0 : index
      %c0_82 = arith.constant 0 : index
      %172 = vector.load %arg3[%c0_81, %c0_82] : memref<1x32xf32, #tpu.memory_space<vmem>>, vector<1x32xf32>
      %cst_83 = arith.constant dense<0.000000e+00> : vector<16xf32>
      %173 = vector.multi_reduction <add>, %170, %cst_83 [1] : vector<16x32xf32> to vector<16xf32>
      %174 = vector.shape_cast %173 : vector<16xf32> to vector<16x1xf32>
      %cst_84 = arith.constant 3.200000e+01 : f32
      %175 = vector.broadcast %cst_84 : f32 to vector<16x1xf32>
      %176 = arith.divf %174, %175 : vector<16x1xf32>
      %177 = vector.broadcast %176 : vector<16x1xf32> to vector<16x32xf32>
      %178 = arith.subf %170, %177 : vector<16x32xf32>
      %179 = arith.mulf %178, %178 : vector<16x32xf32>
      %cst_85 = arith.constant dense<0.000000e+00> : vector<16xf32>
      %180 = vector.multi_reduction <add>, %179, %cst_85 [1] : vector<16x32xf32> to vector<16xf32>
      %181 = vector.shape_cast %180 : vector<16xf32> to vector<16x1xf32>
      %cst_86 = arith.constant 3.200000e+01 : f32
      %182 = vector.broadcast %cst_86 : f32 to vector<16x1xf32>
      %183 = arith.divf %181, %182 : vector<16x1xf32>
      %184 = vector.broadcast %176 : vector<16x1xf32> to vector<16x32xf32>
      %185 = arith.subf %170, %184 : vector<16x32xf32>
      %cst_87 = arith.constant 9.99999996E-13 : f32
      %186 = vector.broadcast %cst_87 : f32 to vector<16x1xf32>
      %187 = arith.addf %183, %186 : vector<16x1xf32>
      %188 = math.rsqrt %187 : vector<16x1xf32>
      %189 = vector.broadcast %188 : vector<16x1xf32> to vector<16x32xf32>
      %190 = arith.mulf %185, %189 : vector<16x32xf32>
      %191 = vector.broadcast %171 : vector<1x32xf32> to vector<16x32xf32>
      %192 = arith.mulf %190, %191 : vector<16x32xf32>
      %193 = vector.broadcast %172 : vector<1x32xf32> to vector<16x32xf32>
      %194 = arith.addf %192, %193 : vector<16x32xf32>
      %195 = vector.shape_cast %194 : vector<16x32xf32> to vector<2x8x32xf32>
      %c0_88 = arith.constant 0 : index
      %c0_89 = arith.constant 0 : index
      %c0_90 = arith.constant 0 : index
      %196 = vector.load %arg18[%c0_88, %c0_89, %c0_90] : memref<2x8x32xf32, #tpu.memory_space<vmem>>, vector<2x8x32xf32>
      tpu.vector_store %arg18[%c0_88, %c0_89, %c0_90], %195 {strides = array<i32>} : memref<2x8x32xf32, #tpu.memory_space<vmem>>, vector<2x8x32xf32>,
      %cst_91 = arith.constant 0.000000e+00 : f32
      %197 = vector.broadcast %cst_91 : f32 to vector<2x3xf32>
      %c0_92 = arith.constant 0 : index
      %c0_93 = arith.constant 0 : index
      %198 = vector.load %arg19[%c0_92, %c0_93] : memref<2x3xf32, #tpu.memory_space<vmem>>, vector<2x3xf32>
      tpu.vector_store %arg19[%c0_92, %c0_93], %197 {strides = array<i32>} : memref<2x3xf32, #tpu.memory_space<vmem>>, vector<2x3xf32>,
    } else {
    }
    %c0 = arith.constant 0 : index
    %c0_1 = arith.constant 0 : index
    %c0_2 = arith.constant 0 : index
    %3 = vector.load %arg18[%c0, %c0_1, %c0_2] : memref<2x8x32xf32, #tpu.memory_space<vmem>>, vector<2x8x32xf32>
    %4 = vector.shape_cast %3 : vector<2x8x32xf32> to vector<16x32xf32>
    %c0_3 = arith.constant 0 : index
    %c0_4 = arith.constant 0 : index
    %c0_5 = arith.constant 0 : index
    %5 = vector.load %arg4[%c0_3, %c0_4, %c0_5] : memref<1x1x32xf32, #tpu.memory_space<vmem>>, vector<1x1x32xf32>
    %6 = vector.shape_cast %5 : vector<1x1x32xf32> to vector<1x32xf32>
    %c0_6 = arith.constant 0 : index
    %c0_7 = arith.constant 0 : index
    %c0_8 = arith.constant 0 : index
    %7 = vector.load %arg5[%c0_6, %c0_7, %c0_8] : memref<1x1x32xf32, #tpu.memory_space<vmem>>, vector<1x1x32xf32>
    %8 = vector.shape_cast %7 : vector<1x1x32xf32> to vector<1x32xf32>
    %cst = arith.constant dense<0.000000e+00> : vector<16xf32>
    %9 = vector.multi_reduction <add>, %4, %cst [1] : vector<16x32xf32> to vector<16xf32>
    %10 = vector.shape_cast %9 : vector<16xf32> to vector<16x1xf32>
    %cst_9 = arith.constant 3.200000e+01 : f32
    %11 = vector.broadcast %cst_9 : f32 to vector<16x1xf32>
    %12 = arith.divf %10, %11 : vector<16x1xf32>
    %13 = vector.broadcast %12 : vector<16x1xf32> to vector<16x32xf32>
    %14 = arith.subf %4, %13 : vector<16x32xf32>
    %15 = arith.mulf %14, %14 : vector<16x32xf32>
    %cst_10 = arith.constant dense<0.000000e+00> : vector<16xf32>
    %16 = vector.multi_reduction <add>, %15, %cst_10 [1] : vector<16x32xf32> to vector<16xf32>
    %17 = vector.shape_cast %16 : vector<16xf32> to vector<16x1xf32>
    %cst_11 = arith.constant 3.200000e+01 : f32
    %18 = vector.broadcast %cst_11 : f32 to vector<16x1xf32>
    %19 = arith.divf %17, %18 : vector<16x1xf32>
    %20 = vector.broadcast %12 : vector<16x1xf32> to vector<16x32xf32>
    %21 = arith.subf %4, %20 : vector<16x32xf32>
    %cst_12 = arith.constant 9.99999974E-6 : f32
    %22 = vector.broadcast %cst_12 : f32 to vector<16x1xf32>
    %23 = arith.addf %19, %22 : vector<16x1xf32>
    %24 = math.rsqrt %23 : vector<16x1xf32>
    %25 = vector.broadcast %24 : vector<16x1xf32> to vector<16x32xf32>
    %26 = arith.mulf %21, %25 : vector<16x32xf32>
    %27 = vector.broadcast %6 : vector<1x32xf32> to vector<16x32xf32>
    %28 = arith.mulf %26, %27 : vector<16x32xf32>
    %29 = vector.broadcast %8 : vector<1x32xf32> to vector<16x32xf32>
    %30 = arith.addf %28, %29 : vector<16x32xf32>
    %31 = arith.truncf %30 : vector<16x32xf32> to vector<16x32xbf16>
    %c0_13 = arith.constant 0 : index
    %c0_14 = arith.constant 0 : index
    %c0_15 = arith.constant 0 : index
    %32 = vector.load %arg6[%c0_13, %c0_14, %c0_15] : memref<1x32x96xbf16, #tpu.memory_space<vmem>>, vector<1x32x96xbf16>
    %33 = vector.shape_cast %32 : vector<1x32x96xbf16> to vector<32x96xbf16>
    %cst_16 = arith.constant dense<0.000000e+00> : vector<16x96xf32>
    %34 = tpu.matmul %31, %33, %cst_16 {dimension_numbers = #tpu.dot_dimension_numbers<[1], [0], [0], [1], [0, 0, 1, 1], [], []>} : vector<16x32xbf16>, vector<32x96xbf16>, vector<16x96xf32> -> vector<16x96xf32>
    %c0_17 = arith.constant 0 : index
    %c0_18 = arith.constant 0 : index
    %c0_19 = arith.constant 0 : index
    %35 = vector.load %arg7[%c0_17, %c0_18, %c0_19] : memref<1x1x96xf32, #tpu.memory_space<vmem>>, vector<1x1x96xf32>
    %36 = vector.shape_cast %35 : vector<1x1x96xf32> to vector<1x96xf32>
    %37 = vector.broadcast %36 : vector<1x96xf32> to vector<16x96xf32>
    %38 = arith.addf %34, %37 : vector<16x96xf32>
    %39 = vector.extract_strided_slice %38 {offsets = [0, 0], sizes = [16, 32], strides = [1, 1]} : vector<16x96xf32> to vector<16x32xf32>
    %cst_20 = arith.constant 0.353553385 : f32
    %40 = vector.broadcast %cst_20 : f32 to vector<16x32xf32>
    %41 = arith.mulf %39, %40 : vector<16x32xf32>
    %42 = vector.extract_strided_slice %38 {offsets = [0, 32], sizes = [16, 32], strides = [1, 1]} : vector<16x96xf32> to vector<16x32xf32>
    %43 = vector.extract_strided_slice %38 {offsets = [0, 64], sizes = [16, 32], strides = [1, 1]} : vector<16x96xf32> to vector<16x32xf32>
    %44 = vector.shape_cast %41 : vector<16x32xf32> to vector<2x8x4x8xf32>
    %45 = tpu.transpose %44, [0, 2, 1, 3] : vector<2x8x4x8xf32> -> vector<2x4x8x8xf32>
    %46 = vector.shape_cast %45 : vector<2x4x8x8xf32> to vector<8x8x8xf32>
    %47 = arith.truncf %46 : vector<8x8x8xf32> to vector<8x8x8xbf16>
    %48 = vector.shape_cast %42 : vector<16x32xf32> to vector<2x8x4x8xf32>
    %49 = tpu.transpose %48, [0, 2, 1, 3] : vector<2x8x4x8xf32> -> vector<2x4x8x8xf32>
    %50 = vector.shape_cast %49 : vector<2x4x8x8xf32> to vector<8x8x8xf32>
    %51 = arith.truncf %50 : vector<8x8x8xf32> to vector<8x8x8xbf16>
    %52 = vector.shape_cast %43 : vector<16x32xf32> to vector<2x8x4x8xf32>
    %53 = tpu.transpose %52, [0, 2, 1, 3] : vector<2x8x4x8xf32> -> vector<2x4x8x8xf32>
    %54 = vector.shape_cast %53 : vector<2x4x8x8xf32> to vector<8x8x8xf32>
    %55 = arith.truncf %54 : vector<8x8x8xf32> to vector<8x8x8xbf16>
    "tpu.trace_start"() <{level = 10 : i32, message = "xqd,xkd->xqk"}> : () -> ()
    %cst_21 = arith.constant dense<0.000000e+00> : vector<8x8x8xf32>
    %56 = tpu.matmul %47, %51, %cst_21 {dimension_numbers = #tpu.dot_dimension_numbers<[2], [2], [1], [1], [0, 0, 0, 1, 1, 1], [0], [0]>} : vector<8x8x8xbf16>, vector<8x8x8xbf16>, vector<8x8x8xf32> -> vector<8x8x8xf32>
    "tpu.trace_stop"() : () -> ()
    %cst_22 = arith.constant dense<0xFF800000> : vector<8x8xf32>
    %57 = vector.multi_reduction <maximumf>, %56, %cst_22 [2] : vector<8x8x8xf32> to vector<8x8xf32>
    %58 = vector.shape_cast %57 : vector<8x8xf32> to vector<8x8x1xf32>
    %59 = vector.broadcast %58 : vector<8x8x1xf32> to vector<8x8x8xf32>
    %60 = arith.subf %56, %59 : vector<8x8x8xf32>
    %61 = math.exp %60 : vector<8x8x8xf32>
    %cst_23 = arith.constant dense<0.000000e+00> : vector<8x8xf32>
    %62 = vector.multi_reduction <add>, %61, %cst_23 [2] : vector<8x8x8xf32> to vector<8x8xf32>
    %63 = vector.shape_cast %62 : vector<8x8xf32> to vector<8x8x1xf32>
    %64 = tpu.reciprocal %63 {approx = true} : vector<8x8x1xf32> -> vector<8x8x1xf32>
    %65 = vector.broadcast %64 : vector<8x8x1xf32> to vector<8x8x8xf32>
    %66 = arith.mulf %61, %65 : vector<8x8x8xf32>
    %67 = arith.truncf %66 : vector<8x8x8xf32> to vector<8x8x8xbf16>
    "tpu.trace_start"() <{level = 10 : i32, message = "xqk,xkd->xqd"}> : () -> ()
    %cst_24 = arith.constant dense<0.000000e+00> : vector<8x8x8xf32>
    %68 = tpu.matmul %67, %55, %cst_24 {dimension_numbers = #tpu.dot_dimension_numbers<[2], [1], [1], [2], [0, 0, 0, 1, 1, 2], [0], [0]>} : vector<8x8x8xbf16>, vector<8x8x8xbf16>, vector<8x8x8xf32> -> vector<8x8x8xf32>
    "tpu.trace_stop"() : () -> ()
    %69 = vector.shape_cast %68 : vector<8x8x8xf32> to vector<2x4x8x8xf32>
    %70 = tpu.transpose %69, [0, 2, 1, 3] : vector<2x4x8x8xf32> -> vector<2x8x4x8xf32>
    %71 = vector.shape_cast %70 : vector<2x8x4x8xf32> to vector<16x32xf32>
    %72 = arith.truncf %71 : vector<16x32xf32> to vector<16x32xbf16>
    %c0_25 = arith.constant 0 : index
    %c0_26 = arith.constant 0 : index
    %c0_27 = arith.constant 0 : index
    %73 = vector.load %arg8[%c0_25, %c0_26, %c0_27] : memref<1x32x32xbf16, #tpu.memory_space<vmem>>, vector<1x32x32xbf16>
    %74 = vector.shape_cast %73 : vector<1x32x32xbf16> to vector<32x32xbf16>
    %cst_28 = arith.constant dense<0.000000e+00> : vector<16x32xf32>
    %75 = tpu.matmul %72, %74, %cst_28 {dimension_numbers = #tpu.dot_dimension_numbers<[1], [0], [0], [1], [0, 0, 1, 1], [], []>} : vector<16x32xbf16>, vector<32x32xbf16>, vector<16x32xf32> -> vector<16x32xf32>
    %c0_29 = arith.constant 0 : index
    %c0_30 = arith.constant 0 : index
    %c0_31 = arith.constant 0 : index
    %76 = vector.load %arg9[%c0_29, %c0_30, %c0_31] : memref<1x1x32xf32, #tpu.memory_space<vmem>>, vector<1x1x32xf32>
    %77 = vector.shape_cast %76 : vector<1x1x32xf32> to vector<1x32xf32>
    %78 = vector.broadcast %77 : vector<1x32xf32> to vector<16x32xf32>
    %79 = arith.addf %75, %78 : vector<16x32xf32>
    %80 = arith.addf %4, %79 : vector<16x32xf32>
    %c0_32 = arith.constant 0 : index
    %c0_33 = arith.constant 0 : index
    %c0_34 = arith.constant 0 : index
    %81 = vector.load %arg10[%c0_32, %c0_33, %c0_34] : memref<1x1x32xf32, #tpu.memory_space<vmem>>, vector<1x1x32xf32>
    %82 = vector.shape_cast %81 : vector<1x1x32xf32> to vector<1x32xf32>
    %c0_35 = arith.constant 0 : index
    %c0_36 = arith.constant 0 : index
    %c0_37 = arith.constant 0 : index
    %83 = vector.load %arg11[%c0_35, %c0_36, %c0_37] : memref<1x1x32xf32, #tpu.memory_space<vmem>>, vector<1x1x32xf32>
    %84 = vector.shape_cast %83 : vector<1x1x32xf32> to vector<1x32xf32>
    %cst_38 = arith.constant dense<0.000000e+00> : vector<16xf32>
    %85 = vector.multi_reduction <add>, %80, %cst_38 [1] : vector<16x32xf32> to vector<16xf32>
    %86 = vector.shape_cast %85 : vector<16xf32> to vector<16x1xf32>
    %cst_39 = arith.constant 3.200000e+01 : f32
    %87 = vector.broadcast %cst_39 : f32 to vector<16x1xf32>
    %88 = arith.divf %86, %87 : vector<16x1xf32>
    %89 = vector.broadcast %88 : vector<16x1xf32> to vector<16x32xf32>
    %90 = arith.subf %80, %89 : vector<16x32xf32>
    %91 = arith.mulf %90, %90 : vector<16x32xf32>
    %cst_40 = arith.constant dense<0.000000e+00> : vector<16xf32>
    %92 = vector.multi_reduction <add>, %91, %cst_40 [1] : vector<16x32xf32> to vector<16xf32>
    %93 = vector.shape_cast %92 : vector<16xf32> to vector<16x1xf32>
    %cst_41 = arith.constant 3.200000e+01 : f32
    %94 = vector.broadcast %cst_41 : f32 to vector<16x1xf32>
    %95 = arith.divf %93, %94 : vector<16x1xf32>
    %96 = vector.broadcast %88 : vector<16x1xf32> to vector<16x32xf32>
    %97 = arith.subf %80, %96 : vector<16x32xf32>
    %cst_42 = arith.constant 9.99999974E-6 : f32
    %98 = vector.broadcast %cst_42 : f32 to vector<16x1xf32>
    %99 = arith.addf %95, %98 : vector<16x1xf32>
    %100 = math.rsqrt %99 : vector<16x1xf32>
    %101 = vector.broadcast %100 : vector<16x1xf32> to vector<16x32xf32>
    %102 = arith.mulf %97, %101 : vector<16x32xf32>
    %103 = vector.broadcast %82 : vector<1x32xf32> to vector<16x32xf32>
    %104 = arith.mulf %102, %103 : vector<16x32xf32>
    %105 = vector.broadcast %84 : vector<1x32xf32> to vector<16x32xf32>
    %106 = arith.addf %104, %105 : vector<16x32xf32>
    %107 = arith.truncf %106 : vector<16x32xf32> to vector<16x32xbf16>
    %c0_43 = arith.constant 0 : index
    %c0_44 = arith.constant 0 : index
    %c0_45 = arith.constant 0 : index
    %108 = vector.load %arg12[%c0_43, %c0_44, %c0_45] : memref<1x32x64xbf16, #tpu.memory_space<vmem>>, vector<1x32x64xbf16>
    %109 = vector.shape_cast %108 : vector<1x32x64xbf16> to vector<32x64xbf16>
    %cst_46 = arith.constant dense<0.000000e+00> : vector<16x64xf32>
    %110 = tpu.matmul %107, %109, %cst_46 {dimension_numbers = #tpu.dot_dimension_numbers<[1], [0], [0], [1], [0, 0, 1, 1], [], []>} : vector<16x32xbf16>, vector<32x64xbf16>, vector<16x64xf32> -> vector<16x64xf32>
    %c0_47 = arith.constant 0 : index
    %c0_48 = arith.constant 0 : index
    %c0_49 = arith.constant 0 : index
    %111 = vector.load %arg13[%c0_47, %c0_48, %c0_49] : memref<1x1x64xf32, #tpu.memory_space<vmem>>, vector<1x1x64xf32>
    %112 = vector.shape_cast %111 : vector<1x1x64xf32> to vector<1x64xf32>
    %113 = vector.broadcast %112 : vector<1x64xf32> to vector<16x64xf32>
    %114 = arith.addf %110, %113 : vector<16x64xf32>
    %cst_50 = arith.constant 5.000000e-01 : f32
    %115 = vector.broadcast %cst_50 : f32 to vector<16x64xf32>
    %116 = arith.mulf %115, %114 : vector<16x64xf32>
    %cst_51 = arith.constant 0.707106769 : f32
    %117 = vector.broadcast %cst_51 : f32 to vector<16x64xf32>
    %118 = arith.mulf %114, %117 : vector<16x64xf32>
    %119 = math.absf %118 : vector<16x64xf32>
    %cst_52 = arith.constant 0.327591091 : f32
    %120 = vector.broadcast %cst_52 : f32 to vector<16x64xf32>
    %121 = arith.mulf %120, %119 : vector<16x64xf32>
    %cst_53 = arith.constant 1.000000e+00 : f32
    %122 = vector.broadcast %cst_53 : f32 to vector<16x64xf32>
    %123 = arith.addf %122, %121 : vector<16x64xf32>
    %cst_54 = arith.constant 1.000000e+00 : f32
    %124 = vector.broadcast %cst_54 : f32 to vector<16x64xf32>
    %125 = arith.divf %124, %123 : vector<16x64xf32>
    %cst_55 = arith.constant 1.06140542 : f32
    %126 = vector.broadcast %cst_55 : f32 to vector<16x64xf32>
    %127 = arith.mulf %126, %125 : vector<16x64xf32>
    %cst_56 = arith.constant -1.45315206 : f32
    %128 = vector.broadcast %cst_56 : f32 to vector<16x64xf32>
    %129 = arith.addf %127, %128 : vector<16x64xf32>
    %130 = arith.mulf %129, %125 : vector<16x64xf32>
    %cst_57 = arith.constant 1.42141378 : f32
    %131 = vector.broadcast %cst_57 : f32 to vector<16x64xf32>
    %132 = arith.addf %130, %131 : vector<16x64xf32>
    %133 = arith.mulf %132, %125 : vector<16x64xf32>
    %cst_58 = arith.constant -0.284496725 : f32
    %134 = vector.broadcast %cst_58 : f32 to vector<16x64xf32>
    %135 = arith.addf %133, %134 : vector<16x64xf32>
    %136 = arith.mulf %135, %125 : vector<16x64xf32>
    %cst_59 = arith.constant 0.254829586 : f32
    %137 = vector.broadcast %cst_59 : f32 to vector<16x64xf32>
    %138 = arith.addf %136, %137 : vector<16x64xf32>
    %139 = arith.mulf %138, %125 : vector<16x64xf32>
    %cst_60 = arith.constant 0.000000e+00 : f32
    %140 = vector.broadcast %cst_60 : f32 to vector<16x64xf32>
    %141 = arith.subf %140, %119 : vector<16x64xf32>
    %142 = arith.mulf %141, %119 : vector<16x64xf32>
    %143 = math.exp %142 : vector<16x64xf32>
    %144 = arith.mulf %139, %143 : vector<16x64xf32>
    %cst_61 = arith.constant 1.000000e+00 : f32
    %145 = vector.broadcast %cst_61 : f32 to vector<16x64xf32>
    %146 = arith.subf %145, %144 : vector<16x64xf32>
    %cst_62 = arith.constant 0.000000e+00 : f32
    %147 = vector.broadcast %cst_62 : f32 to vector<16x64xf32>
    %148 = arith.cmpf oge, %118, %147 : vector<16x64xf32>
    %cst_63 = arith.constant 0.000000e+00 : f32
    %149 = vector.broadcast %cst_63 : f32 to vector<16x64xf32>
    %150 = arith.subf %149, %146 : vector<16x64xf32>
    %151 = arith.select %148, %146, %150 : vector<16x64xi1>, vector<16x64xf32>
    %cst_64 = arith.constant 1.000000e+00 : f32
    %152 = vector.broadcast %cst_64 : f32 to vector<16x64xf32>
    %153 = arith.addf %152, %151 : vector<16x64xf32>
    %154 = arith.mulf %116, %153 : vector<16x64xf32>
    %155 = arith.truncf %154 : vector<16x64xf32> to vector<16x64xbf16>
    %c0_65 = arith.constant 0 : index
    %c0_66 = arith.constant 0 : index
    %c0_67 = arith.constant 0 : index
    %156 = vector.load %arg14[%c0_65, %c0_66, %c0_67] : memref<1x64x32xbf16, #tpu.memory_space<vmem>>, vector<1x64x32xbf16>
    %157 = vector.shape_cast %156 : vector<1x64x32xbf16> to vector<64x32xbf16>
    %cst_68 = arith.constant dense<0.000000e+00> : vector<16x32xf32>
    %158 = tpu.matmul %155, %157, %cst_68 {dimension_numbers = #tpu.dot_dimension_numbers<[1], [0], [0], [1], [0, 0, 1, 1], [], []>} : vector<16x64xbf16>, vector<64x32xbf16>, vector<16x32xf32> -> vector<16x32xf32>
    %c0_69 = arith.constant 0 : index
    %c0_70 = arith.constant 0 : index
    %c0_71 = arith.constant 0 : index
    %159 = vector.load %arg15[%c0_69, %c0_70, %c0_71] : memref<1x1x32xf32, #tpu.memory_space<vmem>>, vector<1x1x32xf32>
    %160 = vector.shape_cast %159 : vector<1x1x32xf32> to vector<1x32xf32>
    %161 = vector.broadcast %160 : vector<1x32xf32> to vector<16x32xf32>
    %162 = arith.addf %158, %161 : vector<16x32xf32>
    %163 = arith.addf %80, %162 : vector<16x32xf32>
    %164 = vector.shape_cast %163 : vector<16x32xf32> to vector<2x8x32xf32>
    %c0_72 = arith.constant 0 : index
    %c0_73 = arith.constant 0 : index
    %c0_74 = arith.constant 0 : index
    %165 = vector.load %arg18[%c0_72, %c0_73, %c0_74] : memref<2x8x32xf32, #tpu.memory_space<vmem>>, vector<2x8x32xf32>
    tpu.vector_store %arg18[%c0_72, %c0_73, %c0_74], %164 {strides = array<i32>} : memref<2x8x32xf32, #tpu.memory_space<vmem>>, vector<2x8x32xf32>,
    %c1_i32 = arith.constant 1 : i32
    %166 = arith.cmpi eq, %arg0, %c1_i32 : i32
    %167 = arith.extui %166 : i1 to i32
    %c0_i32_75 = arith.constant 0 : i32
    %168 = arith.cmpi ne, %167, %c0_i32_75 : i32
    scf.if %168 {
      %169 = vector.shape_cast %163 : vector<16x32xf32> to vector<2x8x32xf32>
      %170 = vector.extract_strided_slice %169 {offsets = [0, 0, 0], sizes = [2, 1, 32], strides = [1, 1, 1]} : vector<2x8x32xf32> to vector<2x1x32xf32>
      %171 = vector.shape_cast %170 : vector<2x1x32xf32> to vector<2x32xf32>
      %c0_76 = arith.constant 0 : index
      %c0_77 = arith.constant 0 : index
      %172 = vector.load %arg16[%c0_76, %c0_77] : memref<32x3xf32, #tpu.memory_space<vmem>>, vector<32x3xf32>
      %cst_78 = arith.constant dense<0.000000e+00> : vector<2x3xf32>
      %173 = tpu.matmul %171, %172, %cst_78 {dimension_numbers = #tpu.dot_dimension_numbers<[1], [0], [0], [1], [0, 0, 1, 1], [], []>} : vector<2x32xf32>, vector<32x3xf32>, vector<2x3xf32> -> vector<2x3xf32>
      %c0_79 = arith.constant 0 : index
      %c0_80 = arith.constant 0 : index
      %174 = vector.load %arg17[%c0_79, %c0_80] : memref<1x3xf32, #tpu.memory_space<vmem>>, vector<1x3xf32>
      %175 = vector.broadcast %174 : vector<1x3xf32> to vector<2x3xf32>
      %176 = arith.addf %173, %175 : vector<2x3xf32>
      %c0_81 = arith.constant 0 : index
      %c0_82 = arith.constant 0 : index
      %177 = vector.load %arg19[%c0_81, %c0_82] : memref<2x3xf32, #tpu.memory_space<vmem>>, vector<2x3xf32>
      tpu.vector_store %arg19[%c0_81, %c0_82], %176 {strides = array<i32>} : memref<2x3xf32, #tpu.memory_space<vmem>>, vector<2x3xf32>,
    } else {
    }
    return
  }
  func.func @transform_0(%arg0: i32) -> (i32, i32, i32) {
    %c0_i32 = arith.constant 0 : i32
    %c0_i32_0 = arith.constant 0 : i32
    %c0_i32_1 = arith.constant 0 : i32
    %c0_i32_2 = arith.constant 0 : i32
    return %c0_i32, %c0_i32_0, %c0_i32_1 : i32, i32, i32
  }
  func.func @transform_1(%arg0: i32) -> (i32, i32) {
    %c0_i32 = arith.constant 0 : i32
    %c0_i32_0 = arith.constant 0 : i32
    %c0_i32_1 = arith.constant 0 : i32
    return %c0_i32, %c0_i32_0 : i32, i32
  }
  func.func @transform_2(%arg0: i32) -> (i32, i32) {
    %c0_i32 = arith.constant 0 : i32
    %c0_i32_0 = arith.constant 0 : i32
    %c0_i32_1 = arith.constant 0 : i32
    return %c0_i32, %c0_i32_0 : i32, i32
  }
  func.func @transform_3(%arg0: i32) -> (i32, i32, i32) {
    %c0_i32 = arith.constant 0 : i32
    %c0_i32_0 = arith.constant 0 : i32
    %c0_i32_1 = arith.constant 0 : i32
    return %arg0, %c0_i32, %c0_i32_0 : i32, i32, i32
  }
  func.func @transform_4(%arg0: i32) -> (i32, i32, i32) {
    %c0_i32 = arith.constant 0 : i32
    %c0_i32_0 = arith.constant 0 : i32
    %c0_i32_1 = arith.constant 0 : i32
    return %arg0, %c0_i32, %c0_i32_0 : i32, i32, i32
  }
  func.func @transform_5(%arg0: i32) -> (i32, i32, i32) {
    %c0_i32 = arith.constant 0 : i32
    %c0_i32_0 = arith.constant 0 : i32
    %c0_i32_1 = arith.constant 0 : i32
    return %arg0, %c0_i32, %c0_i32_0 : i32, i32, i32
  }
  func.func @transform_6(%arg0: i32) -> (i32, i32, i32) {
    %c0_i32 = arith.constant 0 : i32
    %c0_i32_0 = arith.constant 0 : i32
    %c0_i32_1 = arith.constant 0 : i32
    return %arg0, %c0_i32, %c0_i32_0 : i32, i32, i32
  }
  func.func @transform_7(%arg0: i32) -> (i32, i32, i32) {
    %c0_i32 = arith.constant 0 : i32
    %c0_i32_0 = arith.constant 0 : i32
    %c0_i32_1 = arith.constant 0 : i32
    return %arg0, %c0_i32, %c0_i32_0 : i32, i32, i32
  }
  func.func @transform_8(%arg0: i32) -> (i32, i32, i32) {
    %c0_i32 = arith.constant 0 : i32
    %c0_i32_0 = arith.constant 0 : i32
    %c0_i32_1 = arith.constant 0 : i32
    return %arg0, %c0_i32, %c0_i32_0 : i32, i32, i32
  }
  func.func @transform_9(%arg0: i32) -> (i32, i32, i32) {
    %c0_i32 = arith.constant 0 : i32
    %c0_i32_0 = arith.constant 0 : i32
    %c0_i32_1 = arith.constant 0 : i32
    return %arg0, %c0_i32, %c0_i32_0 : i32, i32, i32
  }
  func.func @transform_10(%arg0: i32) -> (i32, i32, i32) {
    %c0_i32 = arith.constant 0 : i32
    %c0_i32_0 = arith.constant 0 : i32
    %c0_i32_1 = arith.constant 0 : i32
    return %arg0, %c0_i32, %c0_i32_0 : i32, i32, i32
  }
  func.func @transform_11(%arg0: i32) -> (i32, i32, i32) {
    %c0_i32 = arith.constant 0 : i32
    %c0_i32_0 = arith.constant 0 : i32
    %c0_i32_1 = arith.constant 0 : i32
    return %arg0, %c0_i32, %c0_i32_0 : i32, i32, i32
  }
  func.func @transform_12(%arg0: i32) -> (i32, i32, i32) {
    %c0_i32 = arith.constant 0 : i32
    %c0_i32_0 = arith.constant 0 : i32
    %c0_i32_1 = arith.constant 0 : i32
    return %arg0, %c0_i32, %c0_i32_0 : i32, i32, i32
  }
  func.func @transform_13(%arg0: i32) -> (i32, i32, i32) {
    %c0_i32 = arith.constant 0 : i32
    %c0_i32_0 = arith.constant 0 : i32
    %c0_i32_1 = arith.constant 0 : i32
    return %arg0, %c0_i32, %c0_i32_0 : i32, i32, i32
  }
  func.func @transform_14(%arg0: i32) -> (i32, i32, i32) {
    %c0_i32 = arith.constant 0 : i32
    %c0_i32_0 = arith.constant 0 : i32
    %c0_i32_1 = arith.constant 0 : i32
    return %arg0, %c0_i32, %c0_i32_0 : i32, i32, i32
  }
  func.func @transform_15(%arg0: i32) -> (i32, i32) {
    %c0_i32 = arith.constant 0 : i32
    %c0_i32_0 = arith.constant 0 : i32
    %c0_i32_1 = arith.constant 0 : i32
    return %c0_i32, %c0_i32_0 : i32, i32
  }
  func.func @transform_16(%arg0: i32) -> (i32, i32) {
    %c0_i32 = arith.constant 0 : i32
    %c0_i32_0 = arith.constant 0 : i32
    %c0_i32_1 = arith.constant 0 : i32
    return %c0_i32, %c0_i32_0 : i32, i32
  }
  func.func @transform_17(%arg0: i32) -> (i32, i32, i32) {
    %c0_i32 = arith.constant 0 : i32
    %c0_i32_0 = arith.constant 0 : i32
    %c0_i32_1 = arith.constant 0 : i32
    %c0_i32_2 = arith.constant 0 : i32
    return %c0_i32, %c0_i32_0, %c0_i32_1 : i32, i32, i32
  }
  func.func @transform_18(%arg0: i32) -> (i32, i32) {
    %c0_i32 = arith.constant 0 : i32
    %c0_i32_0 = arith.constant 0 : i32
    %c0_i32_1 = arith.constant 0 : i32
    return %c0_i32, %c0_i32_0 : i32, i32
  }
}

</mosaic_0001>

<bundles_post_ra>
// kernel: transformer_forward.1
= control target key start
LH: loop header
LB: loop body
LE: loop exit
PB: predicated region body
PF: predicated region fallthrough
CT: control target
= control target key end

     0   :  { %s4780_s0 = inlined_call_operand.vmem [shape: f32[2,8,32], index: 0, kind: input, shape index: {}]   ;;  %s4781_s1 = inlined_call_operand.vmem [shape: f32[1,32], index: 1, kind: input, shape index: {}]   ;;  %s4782_s2 = inlined_call_operand.vmem [shape: f32[1,32], index: 2, kind: input, shape index: {}]   ;;  %s4783_s3 = inlined_call_operand.vmem [shape: f32[2,1,32], index: 3, kind: input, shape index: {}]   ;;  %s4784_s4 = inlined_call_operand.vmem [shape: f32[2,1,32], index: 4, kind: input, shape index: {}]   ;;  %s4785_s5 = inlined_call_operand.vmem [shape: bf16[2,32,96], index: 5, kind: input, shape index: {}]   ;;  %s4786_s6 = inlined_call_operand.vmem [shape: f32[2,1,96], index: 6, kind: input, shape index: {}]   ;;  %s4787_s7 = inlined_call_operand.vmem [shape: bf16[2,32,32], index: 7, kind: input, shape index: {}]   ;;  %s4788_s8 = inlined_call_operand.vmem [shape: f32[2,1,32], index: 8, kind: input, shape index: {}]   ;;  %s4789_s9 = inlined_call_operand.vmem [shape: f32[2,1,32], index: 9, kind: input, shape index: {}]   ;;  %s4790_s10 = inlined_call_operand.vmem [shape: f32[2,1,32], index: 10, kind: input, shape index: {}]   ;;  %s4791_s11 = inlined_call_operand.vmem [shape: bf16[2,32,64], index: 11, kind: input, shape index: {}]   ;;  %s4792_s12 = inlined_call_operand.vmem [shape: f32[2,1,64], index: 12, kind: input, shape index: {}]   ;;  %s4793_s13 = inlined_call_operand.vmem [shape: bf16[2,64,32], index: 13, kind: input, shape index: {}]   ;;  %s4794_s14 = inlined_call_operand.vmem [shape: f32[2,1,32], index: 14, kind: input, shape index: {}]   ;;  %s4795_s15 = inlined_call_operand.vmem [shape: f32[32,3], index: 15, kind: input, shape index: {}]   ;;  %s4796_s16 = inlined_call_operand.vmem [shape: f32[1,3], index: 16, kind: input, shape index: {}]   ;;  %s4797_s17 = inlined_call_operand.hbm [shape: f32[2,8,32], index: 17, kind: output, shape index: {0}]   ;;  %s4798_s18 = inlined_call_operand.hbm [shape: f32[2,3], index: 18, kind: output, shape index: {1}]  }
   0x1   :  { %4804 = sst [smem:[#allocation9_spill]] %s4780_s0 }
   0x2   :  { %4805 = sst [smem:[#allocation10_spill]] %s4781_s1 }
   0x3   :  { %4806 = sst [smem:[#allocation11_spill]] %s4782_s2 }
   0x4   :  { %4807 = sst [smem:[#allocation12_spill]] %s4785_s5 }
   0x5   :  { %4808 = sst [smem:[#allocation13_spill]] %s4787_s7 }
   0x6   :  { %4809 = sst [smem:[#allocation14_spill]] %s4795_s15 }
   0x7   :  { %4810 = sst [smem:[#allocation15_spill]] %s4796_s16 }
   0x8   :  { %4811 = sst [smem:[#allocation16_spill]] %s4797_s17 }
   0x9   :  { %4812 = sst [smem:[#allocation17_spill]] %s4798_s18 }
   0xa   :  { %24 = vsyncpa [#allocation3], 0 }
   0xb   :  { %25 = vsyncpa [#allocation5], 0  ;;  %s4147_s27 = smov 0  }
   0xc LB: > { %4813 = sst [smem:[#allocation8_spill]] %s4031_s27  ;;  %s4153_s28 = sadd.s32 4294967295, %s4031_s27   ;;  %s4031_s27 = sphi %s4147_s27, %s31_s27  }
   0xd   : > { %p3568_p0 = scmp.ge.s32.totalorder %s4031_s27, 1  ;;  %p601_p1 = scmp.lt.s32.totalorder %s4031_s27, 3 }
   0xf   : > { %p602_p2 = pnand %p3568_p0, %p601_p1 }
  0x10   : > { %p689_p3 = scmp.lt.s32.totalorder (!%p602_p2), %s4153_s28, 1  ;;  %s4814_s5 = sld [smem:[#allocation12_spill]] (!%p602_p2) }
  0x11   : > { %605 = sbr.rel (%p602_p2) target bundleno = 3417 (0xd59), region = 88  ;;  %s4815_s7 = sld [smem:[#allocation13_spill]] (!%p602_p2) }
  0x12   : > { %p3577_p4 = scmp.ne.s32.totalorder (!%p602_p2), %s4153_s28, 0 }
  0x18   : > { %s4159_s29 = scalar_select %p689_p3, %s4153_s28, 1 }
  0x19   : > { %737 = sbr.rel (%p3577_p4) target bundleno = 350 (0x15e), region = 92  ;;  %s4816_s25 = sld [smem:[#allocation9_spill]] (!%p3577_p4)  ;;  %vm742_vm0 = vcmask (!%p3577_p4), 261120   ;;  %vm788_vm1 = vcmask (!%p3577_p4), 17408   ;;  %v4033_v14 = vmov (!%p3577_p4), 0.0  }
  0x1a   : > { %s3643_s22 = sshll.u32 %s4159_s29, 4  ;;  %s713_s16 = scalar_lea.vmem %s4789_s9, %s4159_s29  ;;  %789 = vst.msk [vmem:[#allocation4] sm:$0x3] (!%p3577_p4), %vm788_vm1, %v4033_v14 }
  0x1b   : > { %s4177_s30 = scalar_lea.vmem %s4814_s5, %s3643_s22  ;;  %s4182_s18 = scalar_lea.vmem %s4815_s7, %s3643_s22 }
  0x1c   : > { %s716_s24 = scalar_lea.vmem %s4790_s10, %s4159_s29  ;;  %s4199_s5 = scalar_lea.vmem %s4791_s11, %s3643_s22 }
  0x1d   : > { %s724_s7 = scalar_lea.vmem %s4792_s12, %s4159_s29  ;;  %s3646_s15 = sshll.u32 %s4159_s29, 5 }
  0x1e   : > { %s4209_s1 = scalar_lea.vmem %s4793_s13, %s3646_s15  ;;  %s732_s2 = scalar_lea.vmem %s4794_s14, %s4159_s29 }
  0x1f   : > { %v738_v0 = vld [vmem:[%s4816_s25] sm:$0xff] (!%p3577_p4)  ;;  %v739_v1 = vld [vmem:[%s4816_s25 + $0x8] sm:$0xff] (!%p3577_p4)  ;;  %s4817_s17 = sld [smem:[#allocation10_spill]] (!%p3577_p4)  ;;  %s4818_s20 = sld [smem:[#allocation11_spill]] (!%p3577_p4) }
  0x20   : > { %v743_v2 = vsel %vm742_vm0, %v738_v0, 0.0  ;;  %v746_v3 = vsel %vm742_vm0, %v739_v1, 0.0 }
  0x21   : > { %744 = vadd.xlane.f32.xlu0 %v743_v2 }
  0x25   : > { %747 = vadd.xlane.f32.xlu0 %v746_v3  ;;  %v3578_v22 = vld [vmem:[%s4817_s17] ss:$0 sm:$0xff] }
  0x26   : > { %v3579_v24 = vld [vmem:[%s4818_s20] ss:$0 sm:$0xff] }
  0xae   : > { %v745_v4 = vpop.xlane.xlu0 %744 }
  0xaf   : > { %v750_v5 = vmul.f32 0.03125, %v745_v4 }
  0xb1   : > { %v752_v6 = vsub.f32 %v738_v0, %v750_v5 }
  0xb2   : > { %v748_v7 = vpop.xlane.xlu0 %747 }
  0xb3   : > { %v751_v8 = vmul.f32 0.03125, %v748_v7  ;;  %v754_v9 = vmul.f32 %v752_v6, %v752_v6 }
  0xb5   : > { %v753_v10 = vsub.f32 %v739_v1, %v751_v8  ;;  %v756_v11 = vsel %vm742_vm0, %v754_v9, 0.0 }
  0xb6   : > { %757 = vadd.xlane.f32.xlu1 %v756_v11 }
  0xb7   : > { %v755_v12 = vmul.f32 %v753_v10, %v753_v10 }
  0xb9   : > { %v759_v13 = vsel %vm742_vm0, %v755_v12, 0.0 }
  0xba   : > { %760 = vadd.xlane.f32.xlu1 %v759_v13 }
 0x143   : > { %v758_v15 = vpop.xlane.xlu1 %757 }
 0x144   : > { %v762_v16 = vmul.f32 0.03125, %v758_v15 }
 0x146   : > { %v764_v17 = vadd.f32 1e-12, %v762_v16 }
 0x147   : > { %v761_v18 = vpop.xlane.xlu1 %760 }
 0x148   : > { %3886 = vrsqrt.f32 %v764_v17  ;;  %v763_v19 = vmul.f32 0.03125, %v761_v18 }
 0x14a   : > { %v765_v20 = vadd.f32 1e-12, %v763_v19 }
 0x14c   : > { %3888 = vrsqrt.f32 %v765_v20 }
 0x152   : > { %v3887_v21 = vpop.eup %3886 }
 0x153   : > { %v768_v23 = vmul.f32 %v3887_v21, %v752_v6 }
 0x155   : > { %v776_v25 = vmul.f32 %v3578_v22, %v768_v23 }
 0x156   : > { %v3889_v26 = vpop.eup %3888 }
 0x157   : > { %v784_v27 = vadd.f32 %v3579_v24, %v776_v25  ;;  %v769_v28 = vmul.f32 %v3889_v26, %v753_v10 }
 0x159   : > { %786 = vst.msk [vmem:[#allocation2] sm:$0xff] %vm742_vm0, %v784_v27  ;;  %v777_v29 = vmul.f32 %v3578_v22, %v769_v28 }
 0x15b   : > { %v785_v30 = vadd.f32 %v3579_v24, %v777_v29 }
 0x15d   : > { %787 = vst.msk [vmem:[#allocation2 + $0x8] sm:$0xff] %vm742_vm0, %v785_v30 }
 0x15e PF: > { %vm794_vm2 = vcmask 261120   ;;  %v3905_v45 = vld [vmem:[%s4177_s30] sm:$0xff]   ;;  %v4034_v46 = vmov 0.0   ;;  %v3906_v47 = vld [vmem:[%s4177_s30 + $0x8] sm:$0xff]   ;;  %vm4035_vm3 = vmmov 0   ;;  %s4819_s22 = scalar_lea.vmem %s4783_s3, %s4159_s29  ;;  %s4820_s15 = scalar_lea.vmem %s4784_s4, %s4159_s29  ;;  %v933_v18 = vlaneseq }
 0x15f   : > { %3698 = vmatprep.subr.bf16.mxu0 %v4034_v46  ;;  %3706 = vmatprep.subr.bf16.mxu1 %v4034_v46  ;;  %v3580_v56 = vld [vmem:[%s4819_s22] ss:$0 sm:$0xff]  ;;  %s4821_s19 = scalar_lea.vmem %s4786_s6, %s4159_s29  ;;  %s4036_s21 = smov 112   ;;  %v4040_v16 = vmov 1983009808   ;;  %vm1830_vm4 = vcmask 64512  }
 0x160   : > { %v790_v31 = vld [vmem:[#allocation2] sm:$0xff]  ;;  %3699 = vmatpush3.bf16.msra.mxu0 %v3905_v45  ;;  %3702 = vmatprep.mubr.msk.bf16.mxu0 %vm4035_vm3, %v4034_v46  ;;  %s4037_s20 = smov 120   ;;  %s4038_s30 = smov 104   ;;  %v931_v17 = vunpack.c.l.s4 %v4040_v16  ;;  %v4041_v20 = vmov 1934713408   ;;  %v934_v23 = vshrl.u32 %v933_v18, 7 }
 0x161   : > { %v795_v33 = vsel %vm794_vm2, %v790_v31, 0.0  ;;  %3700 = vmatprep.subr.bf16.mxu0 %v4034_v46  ;;  %3708 = vmatprep.mubr.msk.bf16.mxu1 %vm4035_vm3, %v4034_v46  ;;  %v3581_v60 = vld [vmem:[%s4820_s15] ss:$0 sm:$0xff]  ;;  %s4039_s23 = smov 96   ;;  %v963_v21 = vunpack.c.l.s4 %v4041_v20  ;;  %s4042_s22 = smov 64   ;;  %vm2298_vm5 = vcmask 1043456  }
 0x162   : > { %796 = vadd.xlane.f32.xlu0 %v795_v33  ;;  %v3582_v1 = vld [vmem:[%s4821_s19] ss:$0 sm:$0xff]  ;;  %v932_v22 = vunpack.c.0.s8 %v931_v17  ;;  %s4043_s26 = smov 16   ;;  %s4044_s27 = smov 8   ;;  %vm2962_vm6 = vcmask 130048   ;;  %vm2965_vm7 = vcmask 195584  }
 0x163   : > { %v964_v26 = vunpack.c.0.s8 %v963_v21  ;;  %s4045_s15 = smov 24   ;;  %s4822_s17 = scalar_lea.vmem %s4788_s8, %s4159_s29  ;;  %vm3244_vm10 = vcmask 523264  }
 0x164   : > { %v791_v32 = vld [vmem:[#allocation2 + $0x8] sm:$0xff]  ;;  %3701 = vmatpush3.bf16.msra.mxu0 %v3906_v47  ;;  %v4311_v27 = vsub.s32 %v932_v22, %v934_v23  ;;  %p3634_p5 = scmp.ne.s32.totalorder %s4153_s28, 1 }
 0x165   : > { %v798_v34 = vsel %vm794_vm2, %v791_v32, 0.0  ;;  %3712 = vmatprep.subr.bf16.mxu0 %v4034_v46  ;;  %vm4047_vm11 = vmmov (!%p3634_p5), 0   ;;  %vm3311_vm12 = vcmask (!%p3634_p5), 1041409   ;;  %vm3385_vm13 = vcmask (!%p3634_p5), 17408  }
 0x166   : > { %799 = vadd.xlane.f32.xlu0 %v798_v34  ;;  %v4313_v34 = vsub.s32 %v964_v26, %v934_v23 }
 0x1ef   : > { %v797_v35 = vpop.xlane.xlu0 %796 }
 0x1f0   : > { %v802_v36 = vmul.f32 0.03125, %v797_v35 }
 0x1f2   : > { %v804_v37 = vsub.f32 %v790_v31, %v802_v36 }
 0x1f3   : > { %v800_v38 = vpop.xlane.xlu0 %799 }
 0x1f4   : > { %v803_v39 = vmul.f32 0.03125, %v800_v38  ;;  %v806_v40 = vmul.f32 %v804_v37, %v804_v37 }
 0x1f6   : > { %v805_v41 = vsub.f32 %v791_v32, %v803_v39  ;;  %v808_v42 = vsel %vm794_vm2, %v806_v40, 0.0 }
 0x1f7   : > { %809 = vadd.xlane.f32.xlu1 %v808_v42 }
 0x1f8   : > { %v807_v43 = vmul.f32 %v805_v41, %v805_v41 }
 0x1fa   : > { %v811_v44 = vsel %vm794_vm2, %v807_v43, 0.0 }
 0x1fb   : > { %812 = vadd.xlane.f32.xlu1 %v811_v44 }
 0x284   : > { %v810_v48 = vpop.xlane.xlu1 %809 }
 0x285   : > { %v814_v49 = vmul.f32 0.03125, %v810_v48 }
 0x287   : > { %v816_v50 = vadd.f32 1e-05, %v814_v49 }
 0x288   : > { %v813_v51 = vpop.xlane.xlu1 %812 }
 0x289   : > { %3915 = vrsqrt.f32 %v816_v50  ;;  %v815_v52 = vmul.f32 0.03125, %v813_v51 }
 0x28b   : > { %v817_v53 = vadd.f32 1e-05, %v815_v52 }
 0x28d   : > { %3917 = vrsqrt.f32 %v817_v53 }
 0x293   : > { %v3916_v54 = vpop.eup %3915 }
 0x294   : > { %v820_v55 = vmul.f32 %v3916_v54, %v804_v37 }
 0x296   : > { %v828_v59 = vmul.f32 %v3580_v56, %v820_v55 }
 0x297   : > { %v3918_v57 = vpop.eup %3917 }
 0x298   : > { %v821_v58 = vmul.f32 %v3918_v57, %v805_v41  ;;  %v836_v62 = vadd.f32 %v3581_v60, %v828_v59 }
 0x29a   : > { %v829_v61 = vmul.f32 %v3580_v56, %v821_v58 }
 0x29c   : > { %v837_v63 = vadd.f32 %v3581_v60, %v829_v61 }
 0x29e   : > { %v838_v0 = vpack.c.bf16 %v837_v63, %v836_v62 }
 0x2a0   : > { %3703 = vmatmul.mubr.msk.bf16.vlgmr.msra.gmra.mrb[0].mxu0 %vm794_vm2, %v838_v0 }
 0x2a1   : > { %3714 = vmatprep.mubr.msk.bf16.mxu0 %vm4035_vm3, %v4034_v46 }
 0x373   : > { %v899_v2 = vpop.f32.mrb[0].mxu0 }
 0x374   : > { %v4266_v3 = vadd.f32 %v3582_v1, %v899_v2  ;;  %v3704_v4 = vpop.f32.mrb[1].mxu0 }
 0x375   : > { %v902_v5 = vpop.f32.mrb[2].mxu0 }
 0x376   : > { %1214 = vrot.lane.b32.xlu1 %v4266_v3, %s4036_s21  ;;  %1210 = vrot.lane.b32.xlu0 %v4266_v3, %s4037_s20  ;;  %v3705_v6 = vpop.f32.mrb[3].mxu0  ;;  %v4272_v7 = vadd.f32 %v3582_v1, %v902_v5  ;;  %v906_v10 = vmul.f32 0.35355338, %v4266_v3 }
 0x378   : > { %v4304_v15 = vmul.f32 0.35355338, %v4272_v7 }
 0x37a   : > { %1218 = vrot.lane.b32.xlu1 %v4266_v3, %s4038_s30  ;;  %1216 = vrot.lane.b32.xlu0 %v4272_v7, %s4036_s21 }
 0x37e   : > { %1222 = vrot.lane.b32.xlu0 %v4266_v3, %s4039_s23  ;;  %1212 = vrot.lane.b32.xlu1 %v4272_v7, %s4037_s20 }
 0x382   : > { %1220 = vrot.lane.b32.xlu1 %v4272_v7, %s4038_s30 }
 0x3e8   : > { %v4281_v8 = vpop.permute.xlu1 %1214  ;;  %v4283_v9 = vpop.permute.xlu0 %1210 }
 0x3e9   : > { %1230 = vrot.lane.b32.xlu0 %v4281_v8, %s4039_s23  ;;  %1226 = vrot.lane.b32.xlu1 %v4283_v9, %s4039_s23 }
 0x3ec   : > { %v4288_v11 = vpop.permute.xlu1 %1218  ;;  %v4297_v13 = vpop.permute.xlu0 %1216 }
 0x3ed   : > { %910 = vrot.lane.b32.xlu0 %v906_v10, %s4037_s20  ;;  %1234 = vrot.lane.b32.xlu1 %v4288_v11, %s4039_s23 }
 0x3f0   : > { %v4293_v12 = vpop.permute.xlu1 %1212  ;;  %v1223_v19 = vpop.permute.xlu0 %1222 }
 0x3f1   : > { %922 = vrot.lane.b32.xlu0 %v906_v10, %s4038_s30  ;;  %916 = vrot.lane.b32.xlu1 %v906_v10, %s4036_s21 }
 0x3f4   : > { %v4299_v14 = vpop.permute.xlu1 %1220 }
 0x3f5   : > { %1224 = vrot.lane.b32.xlu1 %v4272_v7, %s4039_s23  ;;  %1228 = vrot.lane.b32.xlu0 %v4293_v12, %s4039_s23 }
 0x3f9   : > { %1232 = vrot.lane.b32.xlu1 %v4297_v13, %s4039_s23  ;;  %1236 = vrot.lane.b32.xlu0 %v4299_v14, %s4039_s23 }
 0x3fd   : > { %918 = vrot.lane.b32.xlu0 %v4304_v15, %s4036_s21  ;;  %912 = vrot.lane.b32.xlu1 %v4304_v15, %s4037_s20  ;;  %s4824_s21 = sld [smem:[#allocation15_spill]] (!%p3634_p5) }
 0x401   : > { %924 = vrot.lane.b32.xlu1 %v4304_v15, %s4038_s30 }
 0x45b   : > { %v1231_v24 = vpop.permute.xlu0 %1230  ;;  %v1227_v25 = vpop.permute.xlu1 %1226 }
 0x45c   : > { %v1246_v28 = vcombine.low %v1223_v19, %v1231_v24  ;;  %v1247_v29 = vcombine.high %v1223_v19, %v1231_v24 }
 0x45e   : > { %v1254_v35 = vrot.slane %v1246_v28, %v4311_v27  ;;  %v1261_v36 = vrot.slane %v1247_v29, %v4311_v27 }
 0x45f   : > { %v911_v30 = vpop.permute.xlu0 %910  ;;  %v1235_v31 = vpop.permute.xlu1 %1234 }
 0x460   : > { %v1262_v32 = vcombine.low %v1227_v25, %v1235_v31  ;;  %v1263_v33 = vcombine.high %v1227_v25, %v1235_v31 }
 0x462   : > { %v1270_v37 = vrot.slane %v1262_v32, %v4311_v27  ;;  %v1277_v38 = vrot.slane %v1263_v33, %v4311_v27 }
 0x463   : > { %v923_v39 = vpop.permute.xlu0 %922  ;;  %v917_v40 = vpop.permute.xlu1 %916 }
 0x464   : > { %v1278_v41 = vcombine.low %v1254_v35, %v1270_v37  ;;  %v1279_v42 = vcombine.high %v1254_v35, %v1270_v37  ;;  %v1294_v43 = vcombine.low %v1261_v36, %v1277_v38  ;;  %v1295_v44 = vcombine.high %v1261_v36, %v1277_v38 }
 0x465   : > { %v944_v45 = vcombine.low %v911_v30, %v923_v39  ;;  %v945_v47 = vcombine.high %v911_v30, %v923_v39  ;;  %v928_v48 = vcombine.low %v906_v10, %v917_v40  ;;  %v929_v49 = vcombine.high %v906_v10, %v917_v40 }
 0x466   : > { %v1286_v50 = vrot.slane %v1278_v41, %v4313_v34  ;;  %v1293_v51 = vrot.slane %v1279_v42, %v4313_v34  ;;  %v1302_v52 = vrot.slane %v1294_v43, %v4313_v34  ;;  %v1309_v53 = vrot.slane %v1295_v44, %v4313_v34 }
 0x467   : > { %v952_v54 = vrot.slane %v944_v45, %v4311_v27  ;;  %v959_v55 = vrot.slane %v945_v47, %v4311_v27  ;;  %v936_v56 = vrot.slane %v928_v48, %v4311_v27  ;;  %v943_v57 = vrot.slane %v929_v49, %v4311_v27  ;;  %v1229_v58 = vpop.permute.xlu0 %1228  ;;  %v1225_v59 = vpop.permute.xlu1 %1224 }
 0x468   : > { %v1382_v60 = vcombine.low %v1286_v50, %v1293_v51  ;;  %v3590_v61 = vcombine.high %v1286_v50, %v1293_v51  ;;  %v1398_v62 = vcombine.low %v1302_v52, %v1309_v53  ;;  %v3591_v63 = vcombine.high %v1302_v52, %v1309_v53 }
 0x469   : > { %v960_v0 = vcombine.low %v936_v56, %v952_v54  ;;  %v961_v1 = vcombine.high %v936_v56, %v952_v54  ;;  %v976_v2 = vcombine.low %v943_v57, %v959_v55  ;;  %v977_v4 = vcombine.high %v943_v57, %v959_v55 }
 0x46a   : > { %v4332_v23 = vrot.slane %v1382_v60, %v4311_v27  ;;  %v4335_v24 = vrot.slane %v3590_v61, %v4311_v27  ;;  %v4338_v25 = vrot.slane %v1398_v62, %v4311_v27  ;;  %v4341_v26 = vrot.slane %v3591_v63, %v4311_v27 }
 0x46b   : > { %v968_v5 = vrot.slane %v960_v0, %v4313_v34  ;;  %v975_v6 = vrot.slane %v961_v1, %v4313_v34  ;;  %v984_v10 = vrot.slane %v976_v2, %v4313_v34  ;;  %v991_v16 = vrot.slane %v977_v4, %v4313_v34  ;;  %v1237_v17 = vpop.permute.xlu0 %1236  ;;  %v1233_v18 = vpop.permute.xlu1 %1232 }
 0x46c   : > { %v1330_v19 = vcombine.low %v1229_v58, %v1237_v17  ;;  %v1331_v20 = vcombine.high %v1229_v58, %v1237_v17  ;;  %v1314_v21 = vcombine.low %v1225_v59, %v1233_v18  ;;  %v1315_v22 = vcombine.high %v1225_v59, %v1233_v18 }
 0x46d   : > { %v1064_v32 = vcombine.low %v968_v5, %v975_v6  ;;  %v3586_v33 = vcombine.high %v968_v5, %v975_v6  ;;  %v1080_v35 = vcombine.low %v984_v10, %v991_v16  ;;  %v3587_v36 = vcombine.high %v984_v10, %v991_v16 }
 0x46e   : > { %v1338_v28 = vrot.slane %v1330_v19, %v4311_v27  ;;  %v1345_v29 = vrot.slane %v1331_v20, %v4311_v27  ;;  %v1322_v30 = vrot.slane %v1314_v21, %v4311_v27  ;;  %v1329_v31 = vrot.slane %v1315_v22, %v4311_v27 }
 0x46f   : > { %v919_v37 = vpop.permute.xlu0 %918  ;;  %v913_v38 = vpop.permute.xlu1 %912  ;;  %v4354_v50 = vrot.slane %v1064_v32, %v4311_v27  ;;  %v4357_v51 = vrot.slane %v3586_v33, %v4311_v27  ;;  %v1414_v53 = vcombine.low %v4332_v23, %v4335_v24  ;;  %v4364_v54 = vrot.slane %v1080_v35, %v4311_v27 }
 0x470   : > { %v1346_v39 = vcombine.low %v1322_v30, %v1338_v28  ;;  %v1347_v40 = vcombine.high %v1322_v30, %v1338_v28  ;;  %v1362_v41 = vcombine.low %v1329_v31, %v1345_v29  ;;  %v1363_v42 = vcombine.high %v1329_v31, %v1345_v29 }
 0x471   : > { %v996_v43 = vcombine.low %v4304_v15, %v919_v37  ;;  %v997_v44 = vcombine.high %v4304_v15, %v919_v37  ;;  %v1430_v15 = vcombine.low %v4338_v25, %v4341_v26  ;;  %v4367_v55 = vrot.slane %v3587_v36, %v4311_v27 }
 0x472   : > { %v1354_v45 = vrot.slane %v1346_v39, %v4313_v34  ;;  %v1361_v47 = vrot.slane %v1347_v40, %v4313_v34  ;;  %v1370_v48 = vrot.slane %v1362_v41, %v4313_v34  ;;  %v1377_v49 = vrot.slane %v1363_v42, %v4313_v34 }
 0x473   : > { %v925_v52 = vpop.permute.xlu1 %924  ;;  %v1004_v57 = vrot.slane %v996_v43, %v4311_v27  ;;  %v1422_v60 = vrot.slane %v1414_v53, %v4313_v34  ;;  %v1438_v61 = vrot.slane %v1430_v15, %v4313_v34  ;;  %v1011_v1 = vrot.slane %v997_v44, %v4311_v27 }
 0x474   : > { %v1450_v56 = vcombine.low %v1354_v45, %v1361_v47  ;;  %v1012_v58 = vcombine.low %v913_v38, %v925_v52  ;;  %v1013_v59 = vcombine.high %v913_v38, %v925_v52  ;;  %v3592_v62 = vcombine.high %v1354_v45, %v1361_v47 }
 0x475   : > { %v1466_v63 = vcombine.low %v1370_v48, %v1377_v49  ;;  %v3593_v0 = vcombine.high %v1370_v48, %v1377_v49  ;;  %v1446_v5 = vcombine.low %v1422_v60, %v1438_v61  ;;  %v1447_v6 = vcombine.high %v1422_v60, %v1438_v61 }
 0x476   : > { %v1020_v2 = vrot.slane %v1012_v58, %v4311_v27  ;;  %v1027_v4 = vrot.slane %v1013_v59, %v4311_v27  ;;  %v4376_v10 = vrot.slane %v1450_v56, %v4311_v27  ;;  %v1096_v16 = vcombine.low %v4354_v50, %v4357_v51 }
 0x477   : > { %v1112_v17 = vcombine.low %v4364_v54, %v4367_v55  ;;  %v1415_v18 = vcombine.high %v4332_v23, %v4335_v24  ;;  %v1518_v28 = vpack.c.bf16 %v1446_v5, %v1446_v5  ;;  %v1519_v29 = vpack.c.bf16 %v1447_v6, %v1447_v6 }
 0x478   : > { %v1028_v19 = vcombine.low %v1004_v57, %v1020_v2  ;;  %v1029_v20 = vcombine.high %v1004_v57, %v1020_v2  ;;  %v1044_v21 = vcombine.low %v1011_v1, %v1027_v4  ;;  %v1045_v22 = vcombine.high %v1011_v1, %v1027_v4 }
 0x479   : > { %v1104_v30 = vrot.slane %v1096_v16, %v4313_v34  ;;  %v1120_v31 = vrot.slane %v1112_v17, %v4313_v34  ;;  %v1465_v23 = vrot.slane %v3592_v62, %v4311_v27  ;;  %v1835_v24 = vsel %vm1830_vm4, %v1518_v28, 0 }
 0x47a   : > { %v1036_v32 = vrot.slane %v1028_v19, %v4313_v34  ;;  %v1043_v33 = vrot.slane %v1029_v20, %v4313_v34  ;;  %v1052_v35 = vrot.slane %v1044_v21, %v4313_v34  ;;  %v1059_v36 = vrot.slane %v1045_v22, %v4313_v34  ;;  %3707 = vmatpush3.bf16.xpose.msra.mxu1 %v1835_v24 }
 0x47b   : > { %v1881_v37 = vsel %vm1830_vm4, %v1519_v29, 0  ;;  %v1431_v38 = vcombine.high %v4338_v25, %v4341_v26  ;;  %v1128_v39 = vcombine.low %v1104_v30, %v1120_v31  ;;  %v1129_v40 = vcombine.high %v1104_v30, %v1120_v31  ;;  %3718 = vmatprep.subr.bf16.mxu1 %v4034_v46 }
 0x47c   : > { %v1132_v41 = vcombine.low %v1036_v32, %v1043_v33  ;;  %v3588_v42 = vcombine.high %v1036_v32, %v1043_v33  ;;  %3713 = vmatpush3.bf16.xpose.msra.mxu0 %v1881_v37  ;;  %v1429_v43 = vrot.slane %v1415_v18, %v4313_v34  ;;  %v1473_v44 = vrot.slane %v1466_v63, %v4311_v27 }
 0x47d   : > { %v1481_v45 = vrot.slane %v3593_v0, %v4311_v27  ;;  %v1148_v47 = vcombine.low %v1052_v35, %v1059_v36  ;;  %v3589_v48 = vcombine.high %v1052_v35, %v1059_v36  ;;  %3724 = vmatprep.subr.bf16.mxu0 %v4034_v46  ;;  %v1097_v25 = vcombine.high %v4354_v50, %v4357_v51 }
 0x47e   : > { %v1113_v26 = vcombine.high %v4364_v54, %v4367_v55  ;;  %v1445_v49 = vrot.slane %v1431_v38, %v4313_v34  ;;  %v1482_v52 = vcombine.low %v4376_v10, %v1465_v23  ;;  %v1200_v53 = vpack.c.bf16 %v1128_v39, %v1128_v39 }
 0x47f   : > { %v1201_v15 = vpack.c.bf16 %v1129_v40, %v1129_v40  ;;  %v1139_v56 = vrot.slane %v1132_v41, %v4311_v27  ;;  %v1147_v57 = vrot.slane %v3588_v42, %v4311_v27  ;;  %v1155_v60 = vrot.slane %v1148_v47, %v4311_v27 }
 0x480   : > { %v1448_v58 = vcombine.low %v1429_v43, %v1445_v49  ;;  %v1449_v59 = vcombine.high %v1429_v43, %v1445_v49  ;;  %v1163_v61 = vrot.slane %v3589_v48, %v4311_v27  ;;  %v1490_v50 = vrot.slane %v1482_v52, %v4313_v34 }
 0x481   : > { %v1498_v51 = vcombine.low %v1473_v44, %v1481_v45  ;;  %3709 = vmatmul.mubr.msk.bf16.vlgmr.msra.gmra.mrb[0].mxu1 %vm1830_vm4, %v1200_v53  ;;  %v1111_v62 = vrot.slane %v1097_v25, %v4313_v34  ;;  %v1127_v63 = vrot.slane %v1113_v26, %v4313_v34  ;;  %v1483_v4 = vcombine.high %v4376_v10, %v1465_v23 }
 0x482   : > { %v1520_v54 = vpack.c.bf16 %v1448_v58, %v1448_v58  ;;  %v1521_v55 = vpack.c.bf16 %v1449_v59, %v1449_v59  ;;  %3720 = vmatprep.mubr.msk.bf16.mxu1 %vm4035_vm3, %v4034_v46  ;;  %v1499_v5 = vcombine.high %v1473_v44, %v1481_v45  ;;  %v1164_v6 = vcombine.low %v1139_v56, %v1147_v57 }
 0x483   : > { %3715 = vmatmul.mubr.msk.bf16.vlgmr.msra.gmra.mrb[4].mxu0 %vm1830_vm4, %v1201_v15  ;;  %v1506_v0 = vrot.slane %v1498_v51, %v4313_v34  ;;  %v1180_v18 = vcombine.low %v1155_v60, %v1163_v61  ;;  %v1130_v19 = vcombine.low %v1111_v62, %v1127_v63  ;;  %v1131_v20 = vcombine.high %v1111_v62, %v1127_v63 }
 0x484   : > { %v1927_v1 = vsel %vm1830_vm4, %v1520_v54, 0  ;;  %v1973_v2 = vsel %vm1830_vm4, %v1521_v55, 0  ;;  %3726 = vmatprep.mubr.msk.bf16.mxu0 %vm4035_vm3, %v4034_v46  ;;  %v1497_v28 = vrot.slane %v1483_v4, %v4313_v34  ;;  %v1513_v29 = vrot.slane %v1499_v5, %v4313_v34 }
 0x485   : > { %3719 = vmatpush3.bf16.xpose.msra.mxu1 %v1927_v1  ;;  %3725 = vmatpush3.bf16.xpose.msra.mxu0 %v1973_v2  ;;  %v1514_v16 = vcombine.low %v1490_v50, %v1506_v0  ;;  %v1515_v17 = vcombine.high %v1490_v50, %v1506_v0  ;;  %v1202_v10 = vpack.c.bf16 %v1130_v19, %v1130_v19 }
 0x486   : > { %3730 = vmatprep.subr.bf16.mxu1 %v4034_v46  ;;  %3736 = vmatprep.subr.bf16.mxu0 %v4034_v46  ;;  %v1203_v30 = vpack.c.bf16 %v1131_v20, %v1131_v20  ;;  %v1172_v31 = vrot.slane %v1164_v6, %v4313_v34  ;;  %v1188_v32 = vrot.slane %v1180_v18, %v4313_v34 }
 0x487   : > { %v1522_v21 = vpack.c.bf16 %v1514_v16, %v1514_v16  ;;  %v1523_v22 = vpack.c.bf16 %v1515_v17, %v1515_v17  ;;  %v1516_v36 = vcombine.low %v1497_v28, %v1513_v29  ;;  %v1517_v23 = vcombine.high %v1497_v28, %v1513_v29 }
 0x488   : > { %v1165_v24 = vcombine.high %v1139_v56, %v1147_v57  ;;  %v1181_v37 = vcombine.high %v1155_v60, %v1163_v61  ;;  %v1196_v38 = vcombine.low %v1172_v31, %v1188_v32  ;;  %v1197_v39 = vcombine.high %v1172_v31, %v1188_v32 }
 0x489   : > { %v2019_v33 = vsel %vm1830_vm4, %v1522_v21, 0  ;;  %v2065_v35 = vsel %vm1830_vm4, %v1523_v22, 0  ;;  %v1524_v40 = vpack.c.bf16 %v1516_v36, %v1516_v36  ;;  %v1525_v41 = vpack.c.bf16 %v1517_v23, %v1517_v23 }
 0x48a   : > { %v1204_v42 = vpack.c.bf16 %v1196_v38, %v1196_v38  ;;  %v1205_v43 = vpack.c.bf16 %v1197_v39, %v1197_v39  ;;  %v1179_v44 = vrot.slane %v1165_v24, %v4313_v34  ;;  %v1195_v45 = vrot.slane %v1181_v37, %v4313_v34 }
 0x48b   : > { %v2111_v47 = vsel %vm1830_vm4, %v1524_v40, 0  ;;  %v2157_v48 = vsel %vm1830_vm4, %v1525_v41, 0 }
 0x48c   : > { %3721 = vmatmul.mubr.msk.bf16.vlgmr.msra.gmra.mrb[4].mxu1 %vm1830_vm4, %v1202_v10  ;;  %3727 = vmatmul.mubr.msk.bf16.vlgmr.msra.gmra.mrb[8].mxu0 %vm1830_vm4, %v1203_v30  ;;  %v1198_v25 = vcombine.low %v1179_v44, %v1195_v45  ;;  %v1199_v26 = vcombine.high %v1179_v44, %v1195_v45 }
 0x48d   : > { %3731 = vmatpush3.bf16.xpose.msra.mxu1 %v2019_v33  ;;  %3737 = vmatpush3.bf16.xpose.msra.mxu0 %v2065_v35 }
 0x48e   : > { %3732 = vmatprep.mubr.msk.bf16.mxu1 %vm4035_vm3, %v4034_v46  ;;  %3738 = vmatprep.mubr.msk.bf16.mxu0 %vm4035_vm3, %v4034_v46  ;;  %v1206_v49 = vpack.c.bf16 %v1198_v25, %v1198_v25  ;;  %v1207_v52 = vpack.c.bf16 %v1199_v26, %v1199_v26 }
 0x48f   : > { %3742 = vmatprep.subr.bf16.mxu1 %v4034_v46  ;;  %3748 = vmatprep.subr.bf16.mxu0 %v4034_v46 }
 0x494   : > { %3733 = vmatmul.mubr.msk.bf16.vlgmr.msra.gmra.mrb[8].mxu1 %vm1830_vm4, %v1204_v42  ;;  %3739 = vmatmul.mubr.msk.bf16.vlgmr.msra.gmra.mrb[12].mxu0 %vm1830_vm4, %v1205_v43 }
 0x495   : > { %3743 = vmatpush3.bf16.xpose.msra.mxu1 %v2111_v47  ;;  %3749 = vmatpush3.bf16.xpose.msra.mxu0 %v2157_v48 }
 0x496   : > { %3744 = vmatprep.mubr.msk.bf16.mxu1 %vm4035_vm3, %v4034_v46  ;;  %3750 = vmatprep.mubr.msk.bf16.mxu0 %vm4035_vm3, %v4034_v46 }
 0x497   : > { %3754 = vmatprep.subr.bf16.mxu1 %v4034_v46  ;;  %3760 = vmatprep.subr.bf16.mxu0 %v4034_v46 }
 0x49c   : > { %3745 = vmatmul.mubr.msk.bf16.vlgmr.msra.gmra.mrb[12].mxu1 %vm1830_vm4, %v1206_v49  ;;  %3751 = vmatmul.mubr.msk.bf16.vlgmr.msra.gmra.mrb[16].mxu0 %vm1830_vm4, %v1207_v52 }
 0x49d   : > { %3756 = vmatprep.mubr.msk.bf16.mxu1 %vm4035_vm3, %v4034_v46  ;;  %3762 = vmatprep.mubr.msk.bf16.mxu0 %vm4035_vm3, %v4034_v46 }
 0x554   : > { %v1871_v53 = vpop.f32.mrb[0].mxu1 }
 0x555   : > { %v3710_v56 = vpop.f32.mrb[1].mxu1  ;;  %v2199_v57 = vsel %vm1830_vm4, %v1871_v53, -inf }
 0x556   : > { %v1917_v15 = vpop.f32.mrb[4].mxu0  ;;  %v1874_v59 = vpop.f32.mrb[2].mxu1  ;;  %2200 = vmax.xlane.f32.xlu0 %v2199_v57 }
 0x557   : > { %v3716_v58 = vpop.f32.mrb[5].mxu0  ;;  %v2202_v60 = vsel %vm1830_vm4, %v1917_v15, -inf  ;;  %v3711_v50 = vpop.f32.mrb[3].mxu1 }
 0x558   : > { %2203 = vmax.xlane.f32.xlu1 %v2202_v60  ;;  %v1920_v61 = vpop.f32.mrb[6].mxu0 }
 0x559   : > { %v3717_v51 = vpop.f32.mrb[7].mxu0 }
 0x55f   : > { %v1963_v54 = vpop.f32.mrb[4].mxu1  ;;  %v2009_v55 = vpop.f32.mrb[8].mxu0 }
 0x560   : > { %v3722_v62 = vpop.f32.mrb[5].mxu1  ;;  %v3728_v63 = vpop.f32.mrb[9].mxu0  ;;  %v2205_v0 = vsel %vm1830_vm4, %v1963_v54, -inf  ;;  %v2208_v6 = vsel %vm1830_vm4, %v2009_v55, -inf }
 0x561   : > { %v1966_v1 = vpop.f32.mrb[6].mxu1  ;;  %2206 = vmax.xlane.f32.xlu0 %v2205_v0  ;;  %v2012_v2 = vpop.f32.mrb[10].mxu0 }
 0x562   : > { %v3723_v4 = vpop.f32.mrb[7].mxu1  ;;  %v3729_v5 = vpop.f32.mrb[11].mxu0 }
 0x565   : > { %2209 = vmax.xlane.f32.xlu0 %v2208_v6 }
 0x567   : > { %v2055_v16 = vpop.f32.mrb[8].mxu1  ;;  %v2101_v17 = vpop.f32.mrb[12].mxu0 }
 0x568   : > { %v3734_v18 = vpop.f32.mrb[9].mxu1  ;;  %v3740_v19 = vpop.f32.mrb[13].mxu0  ;;  %v2211_v20 = vsel %vm1830_vm4, %v2055_v16, -inf  ;;  %v2214_v21 = vsel %vm1830_vm4, %v2101_v17, -inf }
 0x569   : > { %v2058_v22 = vpop.f32.mrb[10].mxu1  ;;  %2212 = vmax.xlane.f32.xlu0 %v2211_v20  ;;  %2215 = vmax.xlane.f32.xlu1 %v2214_v21  ;;  %v2104_v28 = vpop.f32.mrb[14].mxu0 }
 0x56a   : > { %v3735_v29 = vpop.f32.mrb[11].mxu1  ;;  %v3741_v10 = vpop.f32.mrb[15].mxu0 }
 0x56f   : > { %v4463_v30 = vpop.f32.mrb[12].mxu1  ;;  %v4465_v31 = vpop.f32.mrb[16].mxu0 }
 0x570   : > { %v3746_v32 = vpop.f32.mrb[13].mxu1  ;;  %v3752_v33 = vpop.f32.mrb[17].mxu0  ;;  %v2217_v35 = vsel %vm1830_vm4, %v4463_v30, -inf  ;;  %v2220_v38 = vsel %vm1830_vm4, %v4465_v31, -inf }
 0x571   : > { %v2150_v36 = vpop.f32.mrb[14].mxu1  ;;  %2218 = vmax.xlane.f32.xlu0 %v2217_v35  ;;  %v2196_v23 = vpop.f32.mrb[18].mxu0 }
 0x572   : > { %v3747_v24 = vpop.f32.mrb[15].mxu1  ;;  %v3753_v37 = vpop.f32.mrb[19].mxu0 }
 0x57a   : > { %1530 = vrot.lane.b32.xlu1 %v4283_v9, %s4042_s22 }
 0x57e   : > { %1534 = vrot.lane.b32.xlu1 %v4281_v8, %s4042_s22 }
 0x587   : > { %1526 = vrot.lane.b32.xlu0 %v4266_v3, %s4042_s22 }
 0x5a2   : > { %2221 = vmax.xlane.f32.xlu1 %v2220_v38 }
 0x5b3   : > { %1538 = vrot.lane.b32.xlu1 %v4288_v11, %s4042_s22 }
 0x5e3   : > { %v2201_v39 = vpop.xlane.xlu0 %2200 }
 0x5e4   : > { %v2223_v40 = vsub.f32 %v1871_v53, %v2201_v39 }
 0x5e5   : > { %v2204_v41 = vpop.xlane.xlu1 %2203 }
 0x5e6   : > { %v2224_v42 = vsub.f32 %v1917_v15, %v2204_v41  ;;  %v2231_v43 = vmul.f32 1.442695, %v2223_v40 }
 0x5e8   : > { %v2233_v44 = vmul.f32 1.442695, %v2224_v42  ;;  %3919 = vpow2.f32 %v2231_v43 }
 0x5ea   : > { %3921 = vpow2.f32 %v2233_v44 }
 0x5ee   : > { %v2207_v9 = vpop.xlane.xlu0 %2206 }
 0x5ef   : > { %v2225_v8 = vsub.f32 %v1963_v54, %v2207_v9 }
 0x5f1   : > { %v2235_v45 = vmul.f32 1.442695, %v2225_v8 }
 0x5f2   : > { %v2210_v47 = vpop.xlane.xlu0 %2209  ;;  %v4479_v3 = vpop.eup %3919 }
 0x5f3   : > { %3923 = vpow2.f32 %v2235_v45  ;;  %v2226_v48 = vsub.f32 %v2009_v55, %v2210_v47  ;;  %v2247_v11 = vsel %vm1830_vm4, %v4479_v3, 0.0 }
 0x5f4   : > { %v4481_v25 = vpop.eup %3921  ;;  %2248 = vadd.xlane.f32.xlu0 %v2247_v11 }
 0x5f5   : > { %v2237_v26 = vmul.f32 1.442695, %v2226_v48  ;;  %v2250_v49 = vsel %vm1830_vm4, %v4481_v25, 0.0 }
 0x5f6   : > { %v2213_v52 = vpop.xlane.xlu0 %2212  ;;  %v2216_v53 = vpop.xlane.xlu1 %2215  ;;  %2251 = vadd.xlane.f32.xlu1 %v2250_v49 }
 0x5f7   : > { %3925 = vpow2.f32 %v2237_v26  ;;  %v2227_v15 = vsub.f32 %v2055_v16, %v2213_v52  ;;  %v2228_v56 = vsub.f32 %v2101_v17, %v2216_v53 }
 0x5f9   : > { %v2239_v57 = vmul.f32 1.442695, %v2227_v15  ;;  %v2241_v58 = vmul.f32 1.442695, %v2228_v56 }
 0x5fa   : > { %v1531_v63 = vpop.permute.xlu1 %1530 }
 0x5fb   : > { %3927 = vpow2.f32 %v2239_v57 }
 0x5fc   : > { %3929 = vpow2.f32 %v2241_v58 }
 0x5fd   : > { %v4487_v59 = vpop.eup %3923 }
 0x5fe   : > { %v2253_v60 = vsel %vm1830_vm4, %v4487_v59, 0.0  ;;  %v2219_v0 = vpop.xlane.xlu0 %2218  ;;  %v1535_v2 = vpop.permute.xlu1 %1534 }
 0x5ff   : > { %2254 = vadd.xlane.f32.xlu0 %v2253_v60  ;;  %v2229_v1 = vsub.f32 %v4463_v30, %v2219_v0 }
 0x601   : > { %v4491_v61 = vpop.eup %3925  ;;  %v2243_v4 = vmul.f32 1.442695, %v2229_v1 }
 0x602   : > { %v2256_v50 = vsel %vm1830_vm4, %v4491_v61, 0.0  ;;  %v1527_v5 = vpop.permute.xlu0 %1526 }
 0x603   : > { %2257 = vadd.xlane.f32.xlu1 %v2256_v50  ;;  %3931 = vpow2.f32 %v2243_v4  ;;  %v1551_v17 = vcombine.high %v1527_v5, %v1535_v2 }
 0x605   : > { %v4495_v51 = vpop.eup %3927  ;;  %v1565_v20 = vrot.slane %v1551_v17, %v4311_v27 }
 0x606   : > { %v2259_v54 = vsel %vm1830_vm4, %v4495_v51, 0.0  ;;  %v4499_v55 = vpop.eup %3929 }
 0x607   : > { %2260 = vadd.xlane.f32.xlu0 %v2259_v54  ;;  %v2262_v62 = vsel %vm1830_vm4, %v4499_v55, 0.0 }
 0x60b   : > { %2263 = vadd.xlane.f32.xlu0 %v2262_v62 }
 0x60d   : > { %v4521_v36 = vpop.eup %3931 }
 0x60e   : > { %v2265_v44 = vsel %vm1830_vm4, %v4521_v36, 0.0 }
 0x614   : > { %1532 = vrot.lane.b32.xlu1 %v4293_v12, %s4042_s22  ;;  %v1550_v12 = vcombine.low %v1527_v5, %v1535_v2 }
 0x618   : > { %1536 = vrot.lane.b32.xlu1 %v4297_v13, %s4042_s22 }
 0x61c   : > { %1540 = vrot.lane.b32.xlu1 %v4299_v14, %s4042_s22 }
 0x621   : > { %1528 = vrot.lane.b32.xlu0 %v4272_v7, %s4042_s22  ;;  %v1558_v7 = vrot.slane %v1550_v12, %v4311_v27 }
 0x62f   : > { %v2222_v6 = vpop.xlane.xlu1 %2221 }
 0x630   : > { %v2230_v16 = vsub.f32 %v4465_v31, %v2222_v6 }
 0x632   : > { %v2245_v13 = vmul.f32 1.442695, %v2230_v16 }
 0x633   : > { %v1539_v18 = vpop.permute.xlu1 %1538 }
 0x634   : > { %3933 = vpow2.f32 %v2245_v13  ;;  %v1566_v14 = vcombine.low %v1531_v63, %v1539_v18  ;;  %v1567_v19 = vcombine.high %v1531_v63, %v1539_v18 }
 0x636   : > { %v1574_v21 = vrot.slane %v1566_v14, %v4311_v27  ;;  %v1581_v22 = vrot.slane %v1567_v19, %v4311_v27 }
 0x638   : > { %v1582_v28 = vcombine.low %v1558_v7, %v1574_v21  ;;  %v1583_v29 = vcombine.high %v1558_v7, %v1574_v21  ;;  %v1598_v10 = vcombine.low %v1565_v20, %v1581_v22  ;;  %v1599_v30 = vcombine.high %v1565_v20, %v1581_v22 }
 0x63a   : > { %v1590_v31 = vrot.slane %v1582_v28, %v4313_v34  ;;  %v1597_v32 = vrot.slane %v1583_v29, %v4313_v34  ;;  %v1606_v33 = vrot.slane %v1598_v10, %v4313_v34  ;;  %v1613_v35 = vrot.slane %v1599_v30, %v4313_v34 }
 0x63c   : > { %v1686_v23 = vcombine.low %v1590_v31, %v1597_v32  ;;  %v3594_v24 = vcombine.high %v1590_v31, %v1597_v32  ;;  %v1702_v37 = vcombine.low %v1606_v33, %v1613_v35  ;;  %v3595_v38 = vcombine.high %v1606_v33, %v1613_v35 }
 0x63e   : > { %v4523_v39 = vpop.eup %3933  ;;  %v1693_v40 = vrot.slane %v1686_v23, %v4311_v27  ;;  %v1701_v41 = vrot.slane %v3594_v24, %v4311_v27  ;;  %v1709_v42 = vrot.slane %v1702_v37, %v4311_v27  ;;  %v1717_v43 = vrot.slane %v3595_v38, %v4311_v27 }
 0x63f   : > { %v2268_v9 = vsel %vm1830_vm4, %v4523_v39, 0.0 }
 0x640   : > { %2266 = vadd.xlane.f32.xlu0 %v2265_v44  ;;  %2269 = vadd.xlane.f32.xlu1 %v2268_v9  ;;  %v1718_v8 = vcombine.low %v1693_v40, %v1701_v41  ;;  %v1734_v45 = vcombine.low %v1709_v42, %v1717_v43  ;;  %v1719_v47 = vcombine.high %v1693_v40, %v1701_v41 }
 0x641   : > { %v1735_v48 = vcombine.high %v1709_v42, %v1717_v43 }
 0x642   : > { %v1726_v11 = vrot.slane %v1718_v8, %v4313_v34  ;;  %v1742_v26 = vrot.slane %v1734_v45, %v4313_v34  ;;  %v1733_v49 = vrot.slane %v1719_v47, %v4313_v34 }
 0x643   : > { %v1749_v52 = vrot.slane %v1735_v48, %v4313_v34 }
 0x644   : > { %v1750_v53 = vcombine.low %v1726_v11, %v1742_v26  ;;  %v1751_v15 = vcombine.high %v1726_v11, %v1742_v26 }
 0x645   : > { %v1752_v56 = vcombine.low %v1733_v49, %v1749_v52  ;;  %v1753_v57 = vcombine.high %v1733_v49, %v1749_v52 }
 0x646   : > { %v1822_v58 = vpack.c.bf16 %v1750_v53, %v1750_v53  ;;  %v1823_v60 = vpack.c.bf16 %v1751_v15, %v1751_v15 }
 0x647   : > { %v1824_v5 = vpack.c.bf16 %v1752_v56, %v1752_v56  ;;  %v1825_v16 = vpack.c.bf16 %v1753_v57, %v1753_v57 }
 0x648   : > { %v2300_v50 = vsel %vm2298_vm5, %v1822_v58, 0  ;;  %v2346_v54 = vsel %vm2298_vm5, %v1823_v60, 0 }
 0x649   : > { %3755 = vmatpush3.bf16.msra.mxu1 %v2300_v50  ;;  %3761 = vmatpush3.bf16.msra.mxu0 %v2346_v54  ;;  %v2392_v18 = vsel %vm2298_vm5, %v1824_v5, 0  ;;  %v2438_v14 = vsel %vm2298_vm5, %v1825_v16, 0 }
 0x64a   : > { %3766 = vmatprep.subr.bf16.mxu1 %v4034_v46  ;;  %3772 = vmatprep.subr.bf16.mxu0 %v4034_v46 }
 0x681   : > { %v2249_v62 = vpop.xlane.xlu0 %2248 }
 0x682   : > { %3935 = vrcp.f32 %v2249_v62 }
 0x683   : > { %v2252_v63 = vpop.xlane.xlu1 %2251 }
 0x684   : > { %3937 = vrcp.f32 %v2252_v63 }
 0x68c   : > { %v2255_v0 = vpop.xlane.xlu0 %2254  ;;  %v3936_v1 = vpop.eup %3935 }
 0x68d   : > { %3939 = vrcp.f32 %v2255_v0  ;;  %v2279_v4 = vmul.f32 %v3936_v1, %v4479_v3 }
 0x68e   : > { %v3938_v2 = vpop.eup %3937 }
 0x68f   : > { %v2280_v6 = vmul.f32 %v3938_v2, %v4481_v25  ;;  %v2287_v17 = vpack.c.bf16 %v2279_v4, %v2279_v4 }
 0x690   : > { %v2258_v12 = vpop.xlane.xlu1 %2257 }
 0x691   : > { %3941 = vrcp.f32 %v2258_v12  ;;  %v2288_v13 = vpack.c.bf16 %v2280_v6, %v2280_v6  ;;  %3757 = vmatmul.mubr.msk.bf16.vlgmr.msra.gmra.mrb[16].mxu1 %vm1830_vm4, %v2287_v17 }
 0x692   : > { %3767 = vmatpush3.bf16.msra.mxu1 %v2392_v18  ;;  %3768 = vmatprep.mubr.msk.bf16.mxu1 %vm4035_vm3, %v4034_v46 }
 0x693   : > { %3763 = vmatmul.mubr.msk.bf16.vlgmr.msra.gmra.mrb[20].mxu0 %vm1830_vm4, %v2288_v13  ;;  %3778 = vmatprep.subr.bf16.mxu1 %v4034_v46 }
 0x694   : > { %v2261_v19 = vpop.xlane.xlu0 %2260  ;;  %3773 = vmatpush3.bf16.msra.mxu0 %v2438_v14  ;;  %v1533_v3 = vpop.permute.xlu1 %1532  ;;  %3774 = vmatprep.mubr.msk.bf16.mxu0 %vm4035_vm3, %v4034_v46 }
 0x695   : > { %3784 = vmatprep.subr.bf16.mxu0 %v4034_v46  ;;  %3943 = vrcp.f32 %v2261_v19 }
 0x697   : > { %v3940_v25 = vpop.eup %3939 }
 0x698   : > { %v2281_v7 = vmul.f32 %v3940_v25, %v4487_v59  ;;  %v2264_v20 = vpop.xlane.xlu0 %2263  ;;  %v1537_v21 = vpop.permute.xlu1 %1536 }
 0x699   : > { %3945 = vrcp.f32 %v2264_v20 }
 0x69a   : > { %v2289_v22 = vpack.c.bf16 %v2281_v7, %v2281_v7 }
 0x69b   : > { %v3942_v28 = vpop.eup %3941 }
 0x69c   : > { %v2282_v29 = vmul.f32 %v3942_v28, %v4491_v61  ;;  %v1529_v10 = vpop.permute.xlu0 %1528  ;;  %3769 = vmatmul.mubr.msk.bf16.vlgmr.msra.gmra.mrb[20].mxu1 %vm1830_vm4, %v2289_v22  ;;  %v1541_v30 = vpop.permute.xlu1 %1540 }
 0x69d   : > { %v1618_v31 = vcombine.low %v1529_v10, %v1537_v21  ;;  %v1619_v32 = vcombine.high %v1529_v10, %v1537_v21  ;;  %v1634_v33 = vcombine.low %v1533_v3, %v1541_v30  ;;  %v1635_v35 = vcombine.high %v1533_v3, %v1541_v30  ;;  %3780 = vmatprep.mubr.msk.bf16.mxu1 %vm4035_vm3, %v4034_v46 }
 0x69e   : > { %v2290_v23 = vpack.c.bf16 %v2282_v29, %v2282_v29 }
 0x69f   : > { %v1626_v59 = vrot.slane %v1618_v31, %v4311_v27  ;;  %v1633_v24 = vrot.slane %v1619_v32, %v4311_v27  ;;  %v1642_v37 = vrot.slane %v1634_v33, %v4311_v27  ;;  %v1649_v61 = vrot.slane %v1635_v35, %v4311_v27  ;;  %v3944_v60 = vpop.eup %3943 }
 0x6a0   : > { %3775 = vmatmul.mubr.msk.bf16.vlgmr.msra.gmra.mrb[24].mxu0 %vm1830_vm4, %v2290_v23  ;;  %v2283_v6 = vmul.f32 %v3944_v60, %v4495_v51 }
 0x6a1   : > { %v1650_v38 = vcombine.low %v1626_v59, %v1642_v37  ;;  %v1651_v40 = vcombine.high %v1626_v59, %v1642_v37  ;;  %v1666_v41 = vcombine.low %v1633_v24, %v1649_v61  ;;  %v1667_v42 = vcombine.high %v1633_v24, %v1649_v61  ;;  %3786 = vmatprep.mubr.msk.bf16.mxu0 %vm4035_vm3, %v4034_v46 }
 0x6a2   : > { %v2291_v3 = vpack.c.bf16 %v2283_v6, %v2283_v6 }
 0x6a3   : > { %v1658_v43 = vrot.slane %v1650_v38, %v4313_v34  ;;  %v1665_v44 = vrot.slane %v1651_v40, %v4313_v34  ;;  %v1674_v9 = vrot.slane %v1666_v41, %v4313_v34  ;;  %v1681_v8 = vrot.slane %v1667_v42, %v4313_v34  ;;  %v3946_v0 = vpop.eup %3945 }
 0x6a4   : > { %v2284_v16 = vmul.f32 %v3946_v0, %v4499_v55 }
 0x6a5   : > { %v1754_v45 = vcombine.low %v1658_v43, %v1665_v44  ;;  %v3596_v47 = vcombine.high %v1658_v43, %v1665_v44  ;;  %v1770_v48 = vcombine.low %v1674_v9, %v1681_v8  ;;  %v3597_v11 = vcombine.high %v1674_v9, %v1681_v8 }
 0x6a6   : > { %v2292_v25 = vpack.c.bf16 %v2284_v16, %v2284_v16 }
 0x6a7   : > { %v1761_v26 = vrot.slane %v1754_v45, %v4311_v27  ;;  %v1769_v49 = vrot.slane %v3596_v47, %v4311_v27  ;;  %v1777_v52 = vrot.slane %v1770_v48, %v4311_v27  ;;  %v1785_v53 = vrot.slane %v3597_v11, %v4311_v27 }
 0x6a9   : > { %v1786_v15 = vcombine.low %v1761_v26, %v1769_v49  ;;  %v1802_v56 = vcombine.low %v1777_v52, %v1785_v53  ;;  %v1787_v57 = vcombine.high %v1761_v26, %v1769_v49  ;;  %v1803_v58 = vcombine.high %v1777_v52, %v1785_v53 }
 0x6ab   : > { %v1794_v50 = vrot.slane %v1786_v15, %v4313_v34  ;;  %v1810_v54 = vrot.slane %v1802_v56, %v4313_v34  ;;  %v1801_v62 = vrot.slane %v1787_v57, %v4313_v34  ;;  %v1817_v63 = vrot.slane %v1803_v58, %v4313_v34 }
 0x6ad   : > { %v1818_v1 = vcombine.low %v1794_v50, %v1810_v54  ;;  %v1819_v2 = vcombine.high %v1794_v50, %v1810_v54  ;;  %v1820_v4 = vcombine.low %v1801_v62, %v1817_v63  ;;  %v1821_v5 = vcombine.high %v1801_v62, %v1817_v63 }
 0x6af   : > { %v1826_v12 = vpack.c.bf16 %v1818_v1, %v1818_v1  ;;  %v1827_v17 = vpack.c.bf16 %v1819_v2, %v1819_v2  ;;  %v1828_v14 = vpack.c.bf16 %v1820_v4, %v1820_v4  ;;  %v1829_v19 = vpack.c.bf16 %v1821_v5, %v1821_v5 }
 0x6b1   : > { %v2484_v13 = vsel %vm2298_vm5, %v1826_v12, 0  ;;  %v2530_v18 = vsel %vm2298_vm5, %v1827_v17, 0  ;;  %v2576_v51 = vsel %vm2298_vm5, %v1828_v14, 0  ;;  %v2622_v55 = vsel %vm2298_vm5, %v1829_v19, 0 }
 0x6b2   : > { %3779 = vmatpush3.bf16.msra.mxu1 %v2484_v13  ;;  %3785 = vmatpush3.bf16.msra.mxu0 %v2530_v18 }
 0x6b3   : > { %3790 = vmatprep.subr.bf16.mxu1 %v4034_v46  ;;  %3796 = vmatprep.subr.bf16.mxu0 %v4034_v46 }
 0x6b5   : > { %3781 = vmatmul.mubr.msk.bf16.vlgmr.msra.gmra.mrb[24].mxu1 %vm1830_vm4, %v2291_v3  ;;  %3787 = vmatmul.mubr.msk.bf16.vlgmr.msra.gmra.mrb[28].mxu0 %vm1830_vm4, %v2292_v25 }
 0x6b6   : > { %3791 = vmatpush3.bf16.msra.mxu1 %v2576_v51  ;;  %3797 = vmatpush3.bf16.msra.mxu0 %v2622_v55 }
 0x6b7   : > { %3792 = vmatprep.mubr.msk.bf16.mxu1 %vm4035_vm3, %v4034_v46  ;;  %3798 = vmatprep.mubr.msk.bf16.mxu0 %vm4035_vm3, %v4034_v46 }
 0x6b8   : > { %3802 = vmatprep.subr.bf16.mxu1 %v4034_v46  ;;  %3810 = vmatprep.subr.bf16.mxu0 %v4034_v46 }
 0x6cd   : > { %v2267_v7 = vpop.xlane.xlu0 %2266  ;;  %v2270_v20 = vpop.xlane.xlu1 %2269 }
 0x6ce   : > { %3947 = vrcp.f32 %v2267_v7 }
 0x6cf   : > { %3949 = vrcp.f32 %v2270_v20 }
 0x6d8   : > { %v3948_v21 = vpop.eup %3947 }
 0x6d9   : > { %v3950_v22 = vpop.eup %3949  ;;  %v2285_v28 = vmul.f32 %v3948_v21, %v4521_v36 }
 0x6da   : > { %v2286_v29 = vmul.f32 %v3950_v22, %v4523_v39 }
 0x6db   : > { %v2293_v10 = vpack.c.bf16 %v2285_v28, %v2285_v28 }
 0x6dc   : > { %v2294_v30 = vpack.c.bf16 %v2286_v29, %v2286_v29 }
 0x6dd   : > { %3793 = vmatmul.mubr.msk.bf16.vlgmr.msra.gmra.mrb[28].mxu1 %vm1830_vm4, %v2293_v10 }
 0x6de   : > { %3799 = vmatmul.mubr.msk.bf16.vlgmr.msra.gmra.mrb[32].mxu0 %vm1830_vm4, %v2294_v30  ;;  %3806 = vmatprep.mubr.msk.bf16.mxu1 %vm4035_vm3, %v4034_v46 }
 0x6df   : > { %3814 = vmatprep.mubr.msk.bf16.mxu0 %vm4035_vm3, %v4034_v46 }
 0x764   : > { %v2336_v31 = vpop.f32.mrb[16].mxu1 }
 0x765   : > { %v3758_v33 = vpop.f32.mrb[17].mxu1 }
 0x766   : > { %v2382_v32 = vpop.f32.mrb[20].mxu0  ;;  %v2339_v23 = vpop.f32.mrb[18].mxu1 }
 0x767   : > { %v3764_v35 = vpop.f32.mrb[21].mxu0  ;;  %v3759_v59 = vpop.f32.mrb[19].mxu1 }
 0x768   : > { %v2385_v36 = vpop.f32.mrb[22].mxu0 }
 0x769   : > { %v3765_v39 = vpop.f32.mrb[23].mxu0 }
 0x76f   : > { %v2428_v24 = vpop.f32.mrb[20].mxu1 }
 0x770   : > { %v2664_v37 = vcombine.low %v2336_v31, %v2428_v24  ;;  %v2665_v61 = vcombine.high %v2336_v31, %v2428_v24  ;;  %v3770_v38 = vpop.f32.mrb[21].mxu1 }
 0x771   : > { %v2431_v40 = vpop.f32.mrb[22].mxu1 }
 0x772   : > { %v3771_v41 = vpop.f32.mrb[23].mxu1  ;;  %v2672_v45 = vrot.slane %v2664_v37, %v4311_v27  ;;  %v2679_v47 = vrot.slane %v2665_v61, %v4311_v27 }
 0x773   : > { %v2474_v42 = vpop.f32.mrb[24].mxu0 }
 0x774   : > { %v2680_v43 = vcombine.low %v2382_v32, %v2474_v42  ;;  %v2681_v44 = vcombine.high %v2382_v32, %v2474_v42  ;;  %v3776_v9 = vpop.f32.mrb[25].mxu0 }
 0x775   : > { %v2477_v8 = vpop.f32.mrb[26].mxu0 }
 0x776   : > { %v2688_v48 = vrot.slane %v2680_v43, %v4311_v27  ;;  %v2695_v11 = vrot.slane %v2681_v44, %v4311_v27  ;;  %v3777_v26 = vpop.f32.mrb[27].mxu0 }
 0x778   : > { %v2696_v49 = vcombine.low %v2672_v45, %v2688_v48  ;;  %v2697_v52 = vcombine.high %v2672_v45, %v2688_v48  ;;  %v2712_v53 = vcombine.low %v2679_v47, %v2695_v11  ;;  %v2713_v15 = vcombine.high %v2679_v47, %v2695_v11 }
 0x77a   : > { %v2704_v56 = vrot.slane %v2696_v49, %v4313_v34  ;;  %v2711_v57 = vrot.slane %v2697_v52, %v4313_v34  ;;  %v2720_v58 = vrot.slane %v2712_v53, %v4313_v34  ;;  %v2727_v60 = vrot.slane %v2713_v15, %v4313_v34  ;;  %v3907_v15 = vld [vmem:[%s4182_s18] sm:$0xff]  }
 0x77b   : > { %3803 = vmatpush3.bf16.msra.mxu1 %v3907_v15 }
 0x77c   : > { %v2800_v50 = vcombine.low %v2704_v56, %v2711_v57  ;;  %v3614_v54 = vcombine.high %v2704_v56, %v2711_v57  ;;  %v2816_v62 = vcombine.low %v2720_v58, %v2727_v60  ;;  %v3615_v63 = vcombine.high %v2720_v58, %v2727_v60  ;;  %3804 = vmatprep.subr.bf16.mxu1 %v4034_v46 }
 0x77e   : > { %v2807_v0 = vrot.slane %v2800_v50, %v4311_v27  ;;  %v2815_v1 = vrot.slane %v3614_v54, %v4311_v27  ;;  %v2823_v2 = vrot.slane %v2816_v62, %v4311_v27  ;;  %v2831_v4 = vrot.slane %v3615_v63, %v4311_v27 }
 0x780   : > { %v2833_v5 = vcombine.high %v2807_v0, %v2815_v1  ;;  %v2849_v6 = vcombine.high %v2823_v2, %v2831_v4  ;;  %v2832_v16 = vcombine.low %v2807_v0, %v2815_v1  ;;  %v2848_v12 = vcombine.low %v2823_v2, %v2831_v4 }
 0x782   : > { %v4614_v17 = vrot.slane %v2833_v5, %v4313_v34  ;;  %v4617_v13 = vrot.slane %v2849_v6, %v4313_v34  ;;  %v4620_v18 = vrot.slane %v2832_v16, %v4313_v34  ;;  %v4623_v14 = vrot.slane %v2848_v12, %v4313_v34  ;;  %v3908_v5 = vld [vmem:[%s4182_s18 + $0x8] sm:$0xff]  }
 0x783   : > { %3805 = vmatpush3.bf16.msra.mxu1 %v3908_v5 }
 0x784   : > { %v2866_v19 = vcombine.low %v4614_v17, %v4617_v13  ;;  %v2864_v3 = vcombine.low %v4620_v18, %v4623_v14  ;;  %v2865_v25 = vcombine.high %v4620_v18, %v4623_v14  ;;  %v2867_v51 = vcombine.high %v4614_v17, %v4617_v13  ;;  %3818 = vmatprep.subr.bf16.mxu1 %v4034_v46  ;;  %v3618_v18 = vld [vmem:[%s4822_s17] ss:$0 sm:$0xff] }
 0x788   : > { %v2520_v55 = vpop.f32.mrb[24].mxu1  ;;  %v2566_v7 = vpop.f32.mrb[28].mxu0 }
 0x789   : > { %v3782_v20 = vpop.f32.mrb[25].mxu1  ;;  %v3788_v21 = vpop.f32.mrb[29].mxu0 }
 0x78a   : > { %v2523_v22 = vpop.f32.mrb[26].mxu1  ;;  %v2569_v28 = vpop.f32.mrb[30].mxu0 }
 0x78b   : > { %v3783_v29 = vpop.f32.mrb[27].mxu1  ;;  %v3789_v10 = vpop.f32.mrb[31].mxu0 }
 0x7b0   : > { %v2612_v30 = vpop.f32.mrb[28].mxu1 }
 0x7b1   : > { %v2732_v31 = vcombine.low %v2520_v55, %v2612_v30  ;;  %v2733_v32 = vcombine.high %v2520_v55, %v2612_v30  ;;  %v2658_v33 = vpop.f32.mrb[32].mxu0  ;;  %v3794_v35 = vpop.f32.mrb[29].mxu1 }
 0x7b2   : > { %v2748_v23 = vcombine.low %v2566_v7, %v2658_v33  ;;  %v2749_v36 = vcombine.high %v2566_v7, %v2658_v33  ;;  %v3800_v59 = vpop.f32.mrb[33].mxu0  ;;  %v2615_v39 = vpop.f32.mrb[30].mxu1 }
 0x7b3   : > { %v2740_v24 = vrot.slane %v2732_v31, %v4311_v27  ;;  %v2747_v37 = vrot.slane %v2733_v32, %v4311_v27  ;;  %v2661_v61 = vpop.f32.mrb[34].mxu0  ;;  %v3795_v38 = vpop.f32.mrb[31].mxu1  ;;  %v3963_v59 = vld [vmem:[#allocation2] sm:$0xff] }
 0x7b4   : > { %v2756_v40 = vrot.slane %v2748_v23, %v4311_v27  ;;  %v2763_v41 = vrot.slane %v2749_v36, %v4311_v27  ;;  %v3801_v42 = vpop.f32.mrb[35].mxu0  ;;  %v3964_v61 = vld [vmem:[#allocation2 + $0x8] sm:$0xff] }
 0x7b6   : > { %v2764_v43 = vcombine.low %v2740_v24, %v2756_v40  ;;  %v2765_v44 = vcombine.high %v2740_v24, %v2756_v40  ;;  %v2780_v9 = vcombine.low %v2747_v37, %v2763_v41  ;;  %v2781_v8 = vcombine.high %v2747_v37, %v2763_v41 }
 0x7b8   : > { %v2772_v45 = vrot.slane %v2764_v43, %v4313_v34  ;;  %v2779_v47 = vrot.slane %v2765_v44, %v4313_v34  ;;  %v2788_v48 = vrot.slane %v2780_v9, %v4313_v34  ;;  %v2795_v11 = vrot.slane %v2781_v8, %v4313_v34 }
 0x7ba   : > { %v2868_v26 = vcombine.low %v2772_v45, %v2779_v47  ;;  %v3616_v49 = vcombine.high %v2772_v45, %v2779_v47  ;;  %v2884_v52 = vcombine.low %v2788_v48, %v2795_v11  ;;  %v3617_v53 = vcombine.high %v2788_v48, %v2795_v11 }
 0x7bc   : > { %v2875_v56 = vrot.slane %v2868_v26, %v4311_v27  ;;  %v2883_v57 = vrot.slane %v3616_v49, %v4311_v27  ;;  %v2891_v58 = vrot.slane %v2884_v52, %v4311_v27  ;;  %v2899_v60 = vrot.slane %v3617_v53, %v4311_v27  ;;  %v3909_v49 = vld [vmem:[%s4199_s5] sm:$0xff]   ;;  %v3910_v52 = vld [vmem:[%s4199_s5 + $0x8] sm:$0xff]  }
 0x7bd   : > { %3811 = vmatpush3.bf16.msra.mxu0 %v3909_v49 }
 0x7be   : > { %v2901_v50 = vcombine.high %v2875_v56, %v2883_v57  ;;  %v2917_v54 = vcombine.high %v2891_v58, %v2899_v60  ;;  %v2900_v62 = vcombine.low %v2875_v56, %v2883_v57  ;;  %v2916_v63 = vcombine.low %v2891_v58, %v2899_v60  ;;  %3812 = vmatprep.subr.bf16.mxu0 %v4034_v46 }
 0x7c0   : > { %v2915_v0 = vrot.slane %v2901_v50, %v4313_v34  ;;  %v2931_v1 = vrot.slane %v2917_v54, %v4313_v34  ;;  %v2908_v2 = vrot.slane %v2900_v62, %v4313_v34  ;;  %v2924_v4 = vrot.slane %v2916_v63, %v4313_v34  ;;  %v3622_v62 = vld [vmem:[%s713_s16] ss:$0 sm:$0xff] }
 0x7c1   : > { %3813 = vmatpush3.bf16.msra.mxu0 %v3910_v52 }
 0x7c2   : > { %v2934_v6 = vcombine.low %v2915_v0, %v2931_v1  ;;  %v2933_v16 = vcombine.high %v2908_v2, %v2924_v4  ;;  %v2932_v12 = vcombine.low %v2908_v2, %v2924_v4  ;;  %v2935_v27 = vcombine.high %v2915_v0, %v2931_v1  ;;  %v3623_v2 = vld [vmem:[%s716_s24] ss:$0 sm:$0xff] }
 0x7c4   : > { %v3895_v17 = vpack.i.bf16 %v2934_v6, %v2866_v19  ;;  %v3890_v13 = vpack.i.bf16 %v2933_v16, %v2865_v25  ;;  %v3900_v55 = vpack.i.bf16 %v2935_v27, %v2867_v51  ;;  %v3912_v27 = vld [vmem:[%s4209_s1 + $0x8] sm:$0xff]  }
 0x7c6   : > { %3896 = vrot.lane.b32.xlu1 %v3895_v17, %s4043_s26  ;;  %3891 = vrot.lane.b32.xlu0 %v3890_v13, %s4044_s27  ;;  %v3913_v17 = vld [vmem:[%s4209_s1 + $0x10] sm:$0xff]   ;;  %v3914_v13 = vld [vmem:[%s4209_s1 + $0x18] sm:$0xff]  }
 0x7ca   : > { %3901 = vrot.lane.b32.xlu0 %v3900_v55, %s4045_s15  ;;  %v3624_v55 = vld [vmem:[%s724_s7] ss:$0 sm:$0xff] }
 0x838   : > { %v3897_v7 = vpop.permute.xlu1 %3896  ;;  %v3892_v34 = vpop.permute.xlu0 %3891 }
 0x839   : > { %v3894_v20 = vunpack.i.h.bf16 %v3892_v34  ;;  %v3893_v21 = vunpack.i.l.bf16 %v3892_v34  ;;  %v3899_v22 = vunpack.i.h.bf16 %v3897_v7  ;;  %v3898_v28 = vunpack.i.l.bf16 %v3897_v7 }
 0x83b   : > { %v2960_v19 = vsel %vm1830_vm4, %v2864_v3, %v3893_v21  ;;  %v2961_v25 = vsel %vm1830_vm4, %v2932_v12, %v3894_v20  ;;  %v3911_v12 = vld [vmem:[%s4209_s1] sm:$0xff]  }
 0x83c   : > { %v3902_v51 = vpop.permute.xlu0 %3901  ;;  %v2963_v30 = vsel %vm2962_vm6, %v2960_v19, %v3898_v28  ;;  %v2964_v31 = vsel %vm2962_vm6, %v2961_v25, %v3899_v22 }
 0x83d   : > { %v3904_v29 = vunpack.i.h.bf16 %v3902_v51  ;;  %v3903_v10 = vunpack.i.l.bf16 %v3902_v51 }
 0x83f   : > { %v2966_v32 = vsel %vm2965_vm7, %v2963_v30, %v3903_v10  ;;  %v2967_v33 = vsel %vm2965_vm7, %v2964_v31, %v3904_v29 }
 0x840   : > { %v2968_v35 = vpack.c.bf16 %v2967_v33, %v2966_v32 }
 0x842   : > { %3807 = vmatmul.mubr.msk.bf16.vlgmr.msra.gmra.mrb[32].mxu1 %vm794_vm2, %v2968_v35 }
 0x843   : > { %3826 = vmatprep.mubr.msk.bf16.mxu1 %vm4035_vm3, %v4034_v46  ;;  %3819 = vmatpush3.bf16.msra.mxu1 %v3911_v12  ;;  %v3628_v12 = vld [vmem:[%s732_s2] ss:$0 sm:$0xff]  ;;  %s4823_s2 = sld [smem:[#allocation14_spill]] (!%p3634_p5) }
 0x844   : > { %3820 = vmatprep.subr.bf16.mxu1 %v4034_v46 }
 0x847   : > { %3821 = vmatpush3.bf16.msra.mxu1 %v3912_v27 }
 0x848   : > { %3822 = vmatprep.subr.bf16.mxu1 %v4034_v46 }
 0x84b   : > { %3823 = vmatpush3.bf16.msra.mxu1 %v3913_v17 }
 0x84c   : > { %3824 = vmatprep.subr.bf16.mxu1 %v4034_v46 }
 0x84f   : > { %3825 = vmatpush3.bf16.msra.mxu1 %v3914_v13 }
 0x915   : > { %v3029_v14 = vpop.f32.mrb[32].mxu1 }
 0x916   : > { %v3030_v3 = vadd.f32 %v3618_v18, %v3029_v14  ;;  %v3808_v23 = vpop.f32.mrb[33].mxu1 }
 0x917   : > { %v3032_v36 = vpop.f32.mrb[34].mxu1 }
 0x918   : > { %v4667_v39 = vadd.f32 %v3963_v59, %v3030_v3  ;;  %v3033_v24 = vadd.f32 %v3618_v18, %v3032_v36  ;;  %v3809_v37 = vpop.f32.mrb[35].mxu1 }
 0x91a   : > { %v4669_v38 = vadd.f32 %v3964_v61, %v3033_v24  ;;  %v3040_v40 = vsel %vm794_vm2, %v4667_v39, 0.0 }
 0x91b   : > { %3041 = vadd.xlane.f32.xlu1 %v3040_v40 }
 0x91c   : > { %v3043_v41 = vsel %vm794_vm2, %v4669_v38, 0.0 }
 0x91d   : > { %3044 = vadd.xlane.f32.xlu0 %v3043_v41 }
 0x9a8   : > { %v3042_v42 = vpop.xlane.xlu1 %3041 }
 0x9a9   : > { %v3046_v43 = vmul.f32 0.03125, %v3042_v42 }
 0x9aa   : > { %v3045_v44 = vpop.xlane.xlu0 %3044 }
 0x9ab   : > { %v3048_v9 = vsub.f32 %v4667_v39, %v3046_v43  ;;  %v3047_v8 = vmul.f32 0.03125, %v3045_v44 }
 0x9ad   : > { %v3049_v45 = vsub.f32 %v4669_v38, %v3047_v8  ;;  %v3050_v47 = vmul.f32 %v3048_v9, %v3048_v9 }
 0x9af   : > { %v3052_v48 = vsel %vm794_vm2, %v3050_v47, 0.0  ;;  %v3051_v11 = vmul.f32 %v3049_v45, %v3049_v45 }
 0x9b0   : > { %3053 = vadd.xlane.f32.xlu0 %v3052_v48 }
 0x9b1   : > { %v3055_v26 = vsel %vm794_vm2, %v3051_v11, 0.0 }
 0x9b4   : > { %3056 = vadd.xlane.f32.xlu0 %v3055_v26 }
 0xa3d   : > { %v3054_v53 = vpop.xlane.xlu0 %3053 }
 0xa3e   : > { %v3058_v15 = vmul.f32 0.03125, %v3054_v53 }
 0xa40   : > { %v3060_v56 = vadd.f32 1e-05, %v3058_v15 }
 0xa41   : > { %v3057_v57 = vpop.xlane.xlu0 %3056 }
 0xa42   : > { %3951 = vrsqrt.f32 %v3060_v56  ;;  %v3059_v58 = vmul.f32 0.03125, %v3057_v57 }
 0xa44   : > { %v3061_v60 = vadd.f32 1e-05, %v3059_v58 }
 0xa46   : > { %3953 = vrsqrt.f32 %v3061_v60 }
 0xa4c   : > { %v3952_v50 = vpop.eup %3951 }
 0xa4d   : > { %v3064_v54 = vmul.f32 %v3952_v50, %v3048_v9 }
 0xa4f   : > { %v3072_v0 = vmul.f32 %v3622_v62, %v3064_v54 }
 0xa50   : > { %v3954_v63 = vpop.eup %3953 }
 0xa51   : > { %v3065_v1 = vmul.f32 %v3954_v63, %v3049_v45  ;;  %v3080_v5 = vadd.f32 %v3623_v2, %v3072_v0 }
 0xa53   : > { %v3073_v4 = vmul.f32 %v3622_v62, %v3065_v1 }
 0xa55   : > { %v3081_v6 = vadd.f32 %v3623_v2, %v3073_v4 }
 0xa57   : > { %v3082_v16 = vpack.c.bf16 %v3081_v6, %v3080_v5 }
 0xa59   : > { %3815 = vmatmul.mubr.msk.bf16.vlgmr.msra.gmra.mrb[36].mxu0 %vm794_vm2, %v3082_v16 }
 0xb2c   : > { %v3143_v7 = vpop.f32.mrb[36].mxu0 }
 0xb2d   : > { %v3144_v34 = vadd.f32 %v3624_v55, %v3143_v7  ;;  %v3816_v20 = vpop.f32.mrb[37].mxu0 }
 0xb2e   : > { %v3146_v21 = vpop.f32.mrb[38].mxu0 }
 0xb2f   : > { %v3152_v22 = vmul.f32 0.70710677, %v3144_v34  ;;  %v3147_v28 = vadd.f32 %v3624_v55, %v3146_v21  ;;  %v3817_v19 = vpop.f32.mrb[39].mxu0  ;;  %v3150_v1 = vmul.f32 0.5, %v3144_v34 }
 0xb30   : > { %v4046_v19 = vmov (!%p3634_p5), 0.0|0.0  }
 0xb31   : > { %v3154_v25 = vand.u32 2147483647, %v3152_v22  ;;  %v3153_v51 = vmul.f32 0.70710677, %v3147_v28  ;;  %vm3194_vm8 = vcmp.ge.f32.partialorder %v3152_v22, 0.0  ;;  %v3151_v2 = vmul.f32 0.5, %v3147_v28  ;;  %3841 = vmatprep.subr.bf16.mxu0 (!%p3634_p5), %v4046_v19 }
 0xb32   : > { %v3297_v22 = vld [vmem:[%s4823_s2] sm:$0xff] (!%p3634_p5)  ;;  %v3298_v28 = vld [vmem:[%s4823_s2 + $0x8] sm:$0xff] (!%p3634_p5) }
 0xb33   : > { %v3156_v29 = vmul.f32 0.3275911, %v3154_v25  ;;  %v3155_v10 = vand.u32 2147483647, %v3153_v51  ;;  %v3182_v32 = vsub.f32 0.0, %v3154_v25  ;;  %vm3195_vm9 = vcmp.ge.f32.partialorder %v3153_v51, 0.0 }
 0xb34   : > { %v4048_v51 = vmov (!%p3634_p5), 0.0  }
 0xb35   : > { %v3158_v30 = vadd.f32 1.0, %v3156_v29  ;;  %v3157_v31 = vmul.f32 0.3275911, %v3155_v10  ;;  %v3183_v33 = vsub.f32 0.0, %v3155_v10  ;;  %v3184_v18 = vmul.f32 %v3182_v32, %v3154_v25  ;;  %v3300_v25 = vld [vmem:[%s4823_s2 + $0x18] sm:$0xff] (!%p3634_p5)  ;;  %3838 = vmatprep.mubr.msk.f32.mxu0 (!%p3634_p5), %vm4047_vm11, %v4048_v51 }
 0xb37   : > { %3955 = vrcp.f32 %v3158_v30  ;;  %v3159_v46 = vadd.f32 1.0, %v3157_v31  ;;  %v3185_v36 = vmul.f32 %v3183_v33, %v3155_v10  ;;  %v3186_v59 = vmul.f32 1.442695, %v3184_v18  ;;  %v3635_v31 = vld [vmem:[%s4824_s21] ss:$0 sm:$0xff] (!%p3634_p5) }
 0xb39   : > { %3957 = vrcp.f32 %v3159_v46  ;;  %v3188_v41 = vmul.f32 1.442695, %v3185_v36 }
 0xb3a   : > { %3959 = vpow2.f32 %v3186_v59 }
 0xb3b   : > { %3961 = vpow2.f32 %v3188_v41 }
 0xb41   : > { %v3956_v35 = vpop.eup %3955 }
 0xb42   : > { %v3164_v14 = vmul.f32 1.0614054, %v3956_v35 }
 0xb43   : > { %v3958_v3 = vpop.eup %3957 }
 0xb44   : > { %v3166_v23 = vadd.f32 -1.4531521, %v3164_v14  ;;  %v3165_v24 = vmul.f32 1.0614054, %v3958_v3  ;;  %v3960_v49 = vpop.eup %3959 }
 0xb45   : > { %v3962_v56 = vpop.eup %3961 }
 0xb46   : > { %v3168_v37 = vmul.f32 %v3956_v35, %v3166_v23  ;;  %v3167_v61 = vadd.f32 -1.4531521, %v3165_v24 }
 0xb48   : > { %v3170_v40 = vadd.f32 1.4214138, %v3168_v37  ;;  %v3169_v42 = vmul.f32 %v3958_v3, %v3167_v61 }
 0xb4a   : > { %v3172_v43 = vmul.f32 %v3956_v35, %v3170_v40  ;;  %v3171_v44 = vadd.f32 1.4214138, %v3169_v42 }
 0xb4c   : > { %v3174_v9 = vadd.f32 -0.28449672, %v3172_v43  ;;  %v3173_v8 = vmul.f32 %v3958_v3, %v3171_v44 }
 0xb4e   : > { %v3176_v45 = vmul.f32 %v3956_v35, %v3174_v9  ;;  %v3175_v47 = vadd.f32 -0.28449672, %v3173_v8 }
 0xb50   : > { %v3178_v48 = vadd.f32 0.2548296, %v3176_v45  ;;  %v3177_v11 = vmul.f32 %v3958_v3, %v3175_v47 }
 0xb52   : > { %v3180_v26 = vmul.f32 %v3956_v35, %v3178_v48  ;;  %v3179_v52 = vadd.f32 0.2548296, %v3177_v11 }
 0xb54   : > { %v3190_v53 = vmul.f32 %v3960_v49, %v3180_v26  ;;  %v3181_v15 = vmul.f32 %v3958_v3, %v3179_v52 }
 0xb56   : > { %v3192_v57 = vsub.f32 1.0, %v3190_v53  ;;  %v3191_v58 = vmul.f32 %v3962_v56, %v3181_v15 }
 0xb58   : > { %v3196_v60 = vsub.f32 0.0, %v3192_v57  ;;  %v3193_v50 = vsub.f32 1.0, %v3191_v58 }
 0xb5a   : > { %v3198_v54 = vsel %vm3194_vm8, %v3192_v57, %v3196_v60  ;;  %v3197_v62 = vsub.f32 0.0, %v3193_v50 }
 0xb5b   : > { %v3200_v63 = vadd.f32 1.0, %v3198_v54 }
 0xb5c   : > { %v3199_v0 = vsel %vm3195_vm9, %v3193_v50, %v3197_v62 }
 0xb5d   : > { %v3201_v4 = vadd.f32 1.0, %v3199_v0  ;;  %v3202_v5 = vmul.f32 %v3200_v63, %v3150_v1 }
 0xb5f   : > { %v3203_v6 = vmul.f32 %v3201_v4, %v3151_v2 }
 0xb61   : > { %v3204_v16 = vpack.c.bf16 %v3203_v6, %v3202_v5 }
 0xb63   : > { %3827 = vmatmul.mubr.msk.bf16.vlgmr.msra.gmra.mrb[36].mxu1 %vm3244_vm10, %v3204_v16 }
 0xc36   : > { %v3282_v27 = vpop.f32.mrb[36].mxu1 }
 0xc37   : > { %v3283_v17 = vadd.f32 %v3628_v12, %v3282_v27  ;;  %v3828_v13 = vpop.f32.mrb[37].mxu1  ;;  %3296 = sbr.rel (%p3634_p5) target bundleno = 3355 (0xd1b), region = 96 }
 0xc38   : > { %v3285_v55 = vpop.f32.mrb[38].mxu1 }
 0xc39   : > { %v3289_v7 = vadd.f32 %v3283_v17, %v4667_v39  ;;  %v3286_v20 = vadd.f32 %v3628_v12, %v3285_v55  ;;  %v3829_v34 = vpop.f32.mrb[39].mxu1  ;;  %v3299_v39 = vld [vmem:[%s4823_s2 + $0x10] sm:$0xff] (!%p3634_p5) }
 0xc3a   : > { %v3845_v29 = vpack.c.bf16 (!%p3634_p5), %v3300_v25, %v3299_v39 }
 0xc3b   : > { %3291 = vst.msk [vmem:[#allocation2] sm:$0xff] %vm794_vm2, %v3289_v7  ;;  %v3290_v21 = vadd.f32 %v3286_v20, %v4669_v38  ;;  %v3842_v38 = vpack.c.bf16 (!%p3634_p5), %v3298_v28, %v3297_v22 }
 0xc3d   : > { %3292 = vst.msk [vmem:[#allocation2 + $0x8] sm:$0xff] %vm794_vm2, %v3290_v21  ;;  %3843 = vmatpush3.bf16.msra.mxu0 (!%p3634_p5), %v3842_v38  ;;  %v3310_v10 = vrot.slane (!%p3634_p5), %v3290_v21, 7 }
 0xc3e   : > { %3844 = vmatprep.subr.bf16.mxu0 %v4046_v19 }
 0xc3f   : > { %v3312_v30 = vsel %vm3311_vm12, %v3310_v10, %v3289_v7 }
 0xc41   : > { %3846 = vmatpush3.bf16.msra.mxu0 %v3845_v29 }
 0xc44   : > { %3839 = vmatmul.mubr.msk.f32.vlgmr.msra.gmra.mrb[0].mxu0 %vm794_vm2, %v3312_v30 }
 0xd17   : > { %v3381_v46 = vpop.f32.mrb[0].mxu0 }
 0xd18   : > { %v3382_v32 = vadd.f32 %v3635_v31, %v3381_v46  ;;  %v3840_v33 = vpop.f32.mrb[1].mxu0 }
 0xd1a   : > { %3386 = vst.msk [vmem:[#allocation4] sm:$0x3] %vm3385_vm13, %v3382_v32 }
 0xd1b PF: > { %p3855_p6 = scmp.eq.s32.totalorder %s4153_s28, 1  ;;  %s4049_s5 = smov [#allocation2]  }
 0xd1c   : > { %s3393_s20 = sshll.u32 %s4049_s5, 4  ;;  %s3394_s20 = int_to_ptr.vmem [resolvable:$true] %s3393_s20 }
 0xd1d   : > { %s3965_s16 = scalar_lea.vmem %s3394_s20, 256  ;;  %p3972_p10 = scmp.lt.s32.totalorder %s3394_s20, %s3394_s20 }
 0xd1e   : > { %p3966_p7 = scmp.ne.s32.totalorder %s3394_s20, %s3965_s16  ;;  %p3973_p11 = scmp.lt.s32.totalorder %s3965_s16, %s3965_s16 }
 0xd20   : > { %p3967_p8 = pnand %p3966_p7, %p3855_p6  ;;  %p3974_p12 = por %p3973_p11, %p3972_p10 }
 0xd22   : > { %p3968_p9 = pneg %p3967_p8 }
 0xd24   : > { %p3975_p13 = pnand %p3974_p12, %p3968_p9 }
 0xd26   : > { %3978 = shalt.err (!%p3975_p13)
}
 0xd27   : > { %s4825_s1 = sld [smem:[#allocation16_spill]] }
 0xd2d   : > { %s3979_s30 = scalar_lea.hbm %s4825_s1, 256 }
 0xd2e   : > { %p3980_p0 = scmp.ne.s32.totalorder %s4825_s1, %s3979_s30  ;;  %p3985_p3 = scmp.lt.u32.totalorder %s3979_s30, %s4825_s1 }
 0xd30   : > { %p3981_p1 = pnand %p3980_p0, %p3855_p6 }
 0xd32   : > { %p3982_p2 = pneg %p3981_p1 }
 0xd34   : > { %p3987_p4 = pnand %p3985_p3, %p3982_p2 }
 0xd36   : > { %3990 = shalt.err (!%p3987_p4)
}
 0xd37   : > { %s4050_s15 = smov 128   ;;  %s4051_s17 = smov [#allocation4]  }
 0xd38   : > { %3848 = dma.vmem_to_hbm [thread:$0]  (%p3855_p6), %s3394_s20, 256, %s4825_s1, [#allocation3], %s4050_s15, %s4050_s15, %s4044_s27  }
 0xd39   : > { %s3407_s19 = sshll.u32 %s4051_s17, 4  ;;  %s3408_s19 = int_to_ptr.vmem [resolvable:$true] %s3407_s19 }
 0xd3a   : > { %s3991_s21 = scalar_lea.vmem %s3408_s19, 32  ;;  %p3998_p9 = scmp.lt.s32.totalorder %s3408_s19, %s3408_s19 }
 0xd3b   : > { %p3992_p5 = scmp.ne.s32.totalorder %s3408_s19, %s3991_s21  ;;  %p3999_p10 = scmp.lt.s32.totalorder %s3991_s21, %s3991_s21 }
 0xd3d   : > { %p3993_p7 = pnand %p3992_p5, %p3855_p6  ;;  %p4000_p11 = por %p3999_p10, %p3998_p9 }
 0xd3f   : > { %p3994_p8 = pneg %p3993_p7 }
 0xd41   : > { %p4001_p12 = pnand %p4000_p11, %p3994_p8 }
 0xd43   : > { %4004 = shalt.err (!%p4001_p12)
}
 0xd44   : > { %s4826_s24 = sld [smem:[#allocation17_spill]] }
 0xd4a   : > { %s4005_s7 = scalar_lea.hbm %s4826_s24, 32 }
 0xd4b   : > { %p4006_p13 = scmp.ne.s32.totalorder %s4826_s24, %s4005_s7  ;;  %p4011_p2 = scmp.lt.u32.totalorder %s4005_s7, %s4826_s24 }
 0xd4d   : > { %p4007_p0 = pnand %p4006_p13, %p3855_p6 }
 0xd4f   : > { %p4008_p1 = pneg %p4007_p0 }
 0xd51   : > { %p4013_p3 = pnand %p4011_p2, %p4008_p1 }
 0xd53   : > { %4016 = shalt.err (!%p4013_p3)
}
 0xd54   : > { %3850 = dma.vmem_to_hbm [thread:$0]  (%p3855_p6), %s3408_s19, 32, %s4826_s24, [#allocation5]  }
 0xd55   : > { %4022 = dma.done.wait (%p3855_p6), [#allocation3], 256  }
 0xd56   : > { %4024 = vsyncadd (%p3855_p6), [#allocation3], 4294967040 }
 0xd57   : > { %4026 = dma.done.wait (%p3855_p6), [#allocation5], 32  }
 0xd58   : > { %4028 = vsyncadd (%p3855_p6), [#allocation5], 4294967264 }
 0xd59 PF: > { %s4827_s26 = sld [smem:[#allocation8_spill]] }
 0xd5f   : > { %s31_s27 = sadd.s32 1, %s4827_s26  }
 0xd60   : > { %p28_p4 = scmp.ge.s32.totalorder %s31_s27, 4  }
 0xd62   :  { %30 = sbr.rel (!%p28_p4) target bundleno = 12 (0xc), region = 164 }
 0xd69   :  { %3424 = vsyncpa [#allocation3], 1 }
 0xd6a   :  { %3426 = vsyncpa [#allocation3 + $0x1], 1 }
 0xd6b   :  { %3427 = vsyncpa [#allocation5], 1 }

</bundles_post_ra>
